<compile_context>
chip_gen: v7x
topology: tpu7x:2x2x1
jax: 0.10.0
libtpu: 0.0.40
codegen_flags: <defaults>
</compile_context>

<pallas_src>
import functools

import jax
import jax.numpy as jnp
from jax import lax
from jax.experimental import pallas as pl
from jax.experimental.pallas import tpu as pltpu


def lbp_kernel(n2e_ref, e2e_ref, red_ref, nodef_ref, edgef_ref,
               wn_ref, we_ref, wrec_ref, out_ref, *, steps):
    # bf16 0/1 structure matrices -> f32 once (values are exact; accumulation
    # stays f32). e2e cast is hoisted out of the step loop (reused every step).
    n2e = n2e_ref[...].astype(jnp.float32)
    e2e = e2e_ref[...].astype(jnp.float32)
    red = red_ref[...].astype(jnp.float32)

    # node features -> latent, scattered onto edges (n2e_sp @ .)
    node_lat = jnp.dot(nodef_ref[...], wn_ref[...],
                       preferred_element_type=jnp.float32)
    input_msg = jnp.dot(n2e, node_lat, preferred_element_type=jnp.float32)
    # edge features -> latent, added to the input message
    input_msg = input_msg + jnp.dot(edgef_ref[...], we_ref[...],
                                    preferred_element_type=jnp.float32)
    msg = jnp.maximum(input_msg, 0.0)          # relu

    w_rec = wrec_ref[...]                      # hoisted load (reused per step)

    def body(_, m):
        agg = jnp.dot(e2e, m, preferred_element_type=jnp.float32)
        rec = jnp.dot(agg, w_rec, preferred_element_type=jnp.float32)
        return jnp.maximum(input_msg + rec, 0.0)

    msg = lax.fori_loop(0, steps, body, msg, unroll=True)

    # reduce edge messages back to nodes; (N, D_pad) with D_pad a multiple of
    # 128 -> unmasked lane-dense stores.
    out_ref[...] = jnp.dot(red, msg, preferred_element_type=jnp.float32)


def loopy_belief_propagation(n2e_sp, e2e_sp, reduction_sp,
                             node_feat, edge_feat,
                             w_n2l, w_e2l, w_rec, *, steps=3):
    n_nodes, n_edges = reduction_sp.shape
    out_size = w_n2l.shape[1]

    # --- lane-dense padding of the latent dimension -------------------------
    lane = 128
    d_pad = ((out_size + lane - 1) // lane) * lane

    def pad_cols(w):
        return jnp.pad(w.astype(jnp.float32), ((0, 0), (0, d_pad - w.shape[1])))

    w_n2l_p = pad_cols(w_n2l)
    w_e2l_p = pad_cols(w_e2l)
    w_rec_p = jnp.pad(w_rec.astype(jnp.float32),
                      ((0, d_pad - w_rec.shape[0]), (0, d_pad - w_rec.shape[1])))

    # --- bf16 storage for exact 0/1 incidence matrices ----------------------
    n2e_b = n2e_sp.astype(jnp.bfloat16)
    e2e_b = e2e_sp.astype(jnp.bfloat16)
    red_b = reduction_sp.astype(jnp.bfloat16)

    node_feat = node_feat.astype(jnp.float32)
    edge_feat = edge_feat.astype(jnp.float32)

    inputs = (n2e_b, e2e_b, red_b, node_feat, edge_feat,
              w_n2l_p, w_e2l_p, w_rec_p)

    # --- VMEM budget / cost estimate ----------------------------------------
    in_bytes = sum(int(x.size) * x.dtype.itemsize for x in inputs)
    out_bytes = n_nodes * d_pad * 4
    # f32 casts of the bf16 structure matrices + msg/input_msg/agg/rec temporaries
    scratch_bytes = 4 * (n_edges * n_edges + 2 * n_edges * n_nodes) \
        + 4 * 4 * n_edges * d_pad
    resident = in_bytes + out_bytes + scratch_bytes
    # Raise the default 16/32 MiB scoped limit; cap at 64 MiB (v7x physical).
    vmem_limit = int(min(64 * 2**20, max(32 * 2**20, 2 * resident)))

    flops = 2 * (n_nodes * node_feat.shape[1] * d_pad        # node_feat @ Wn
                 + n_edges * n_nodes * d_pad                 # n2e @ node_lat
                 + n_edges * edge_feat.shape[1] * d_pad      # edge_feat @ We
                 + steps * (n_edges * n_edges * d_pad        # e2e @ msg
                            + n_edges * d_pad * d_pad)       # agg @ Wrec
                 + n_nodes * n_edges * d_pad)                # reduction @ msg
    cost = pl.CostEstimate(flops=flops, transcendentals=0,
                           bytes_accessed=in_bytes + out_bytes)

    vmem = pl.BlockSpec(memory_space=pltpu.MemorySpace.VMEM)
    out_padded = pl.pallas_call(
        functools.partial(lbp_kernel, steps=steps),
        out_shape=jax.ShapeDtypeStruct((n_nodes, d_pad), jnp.float32),
        in_specs=[vmem] * len(inputs),
        out_specs=vmem,
        compiler_params=pltpu.CompilerParams(vmem_limit_bytes=vmem_limit),
        cost_estimate=cost,
    )(*inputs)

    # Strip the lane padding (padded columns are exactly zero by construction).
    return out_padded[:, :out_size]


def loopy_belief_propagation_ref(n2e_sp, e2e_sp, reduction_sp,
                                 node_feat, edge_feat,
                                 w_n2l, w_e2l, w_rec, *, steps=3):
    input_msg = n2e_sp @ (node_feat @ w_n2l) + edge_feat @ w_e2l
    msg = jnp.maximum(input_msg, 0.0)
    for _ in range(steps):
        msg = jnp.maximum(input_msg + (e2e_sp @ msg) @ w_rec, 0.0)
    return reduction_sp @ msg


if __name__ == "__main__":
    key = jax.random.PRNGKey(0)
    k = jax.random.split(key, 8)

    # Small synthetic graph, sized so rows are sublane multiples and the
    # per-step contraction (E) reaches an MXU-friendly 256.
    N = 64            # number of nodes
    E = 256           # number of directed edges
    node_features = 16
    edge_features = 16
    out_size = 32     # latent dim (padded to 128 inside the wrapper)
    steps = 3

    # Dense stand-ins for the sparse structure matrices (0/1 incidence-like).
    n2e_sp = (jax.random.uniform(k[0], (E, N)) < 0.25).astype(jnp.float32)
    e2e_sp = (jax.random.uniform(k[1], (E, E)) < 0.15).astype(jnp.float32)
    reduction_sp = (jax.random.uniform(k[2], (N, E)) < 0.25).astype(jnp.float32)

    node_feat = jax.random.normal(k[3], (N, node_features), dtype=jnp.float32)
    edge_feat = jax.random.normal(k[4], (E, edge_features), dtype=jnp.float32)

    # Linear weights stored as (in, out): x @ W == nn.Linear(bias=False).
    w_n2l = jax.random.normal(k[5], (node_features, out_size),
                              dtype=jnp.float32) * 0.1
    w_e2l = jax.random.normal(k[6], (edge_features, out_size),
                              dtype=jnp.float32) * 0.1
    w_rec = jax.random.normal(k[7], (out_size, out_size),
                              dtype=jnp.float32) * 0.1

    out = loopy_belief_propagation(n2e_sp, e2e_sp, reduction_sp,
                                   node_feat, edge_feat,
                                   w_n2l, w_e2l, w_rec, steps=steps)
    out = jax.block_until_ready(out)

    ref = loopy_belief_propagation_ref(n2e_sp, e2e_sp, reduction_sp,
                                       node_feat, edge_feat,
                                       w_n2l, w_e2l, w_rec, steps=steps)
    assert out.shape == (N, out_size)
    # Tolerance allows only for MXU pass / accumulation-order differences
    # between the Pallas matmuls and XLA's reference matmuls (math is f32).
    assert jnp.allclose(out, ref, atol=1e-3, rtol=1e-3), \
        float(jnp.max(jnp.abs(out - ref)))

    print("KERNEL_OK")
</pallas_src>

<mosaic_0001>
module attributes {stable_mosaic.version = 11 : i64} {
  func.func @lbp_kernel(%arg0: memref<256x64xbf16, #tpu.memory_space<vmem>>, %arg1: memref<256x256xbf16, #tpu.memory_space<vmem>>, %arg2: memref<64x256xbf16, #tpu.memory_space<vmem>>, %arg3: memref<64x16xf32, #tpu.memory_space<vmem>>, %arg4: memref<256x16xf32, #tpu.memory_space<vmem>>, %arg5: memref<16x128xf32, #tpu.memory_space<vmem>>, %arg6: memref<16x128xf32, #tpu.memory_space<vmem>>, %arg7: memref<128x128xf32, #tpu.memory_space<vmem>>, %arg8: memref<64x128xf32, #tpu.memory_space<vmem>>) attributes {dimension_semantics = [], scalar_prefetch = 0 : i64, scratch_operands = 0 : i64, tpu.core_type = #tpu.core_type<tc>} {
    %c0 = arith.constant 0 : index
    %c0_0 = arith.constant 0 : index
    %0 = vector.load %arg0[%c0, %c0_0] : memref<256x64xbf16, #tpu.memory_space<vmem>>, vector<256x64xbf16>
    %1 = arith.extf %0 : vector<256x64xbf16> to vector<256x64xf32>
    %c0_1 = arith.constant 0 : index
    %c0_2 = arith.constant 0 : index
    %2 = vector.load %arg1[%c0_1, %c0_2] : memref<256x256xbf16, #tpu.memory_space<vmem>>, vector<256x256xbf16>
    %3 = arith.extf %2 : vector<256x256xbf16> to vector<256x256xf32>
    %c0_3 = arith.constant 0 : index
    %c0_4 = arith.constant 0 : index
    %4 = vector.load %arg2[%c0_3, %c0_4] : memref<64x256xbf16, #tpu.memory_space<vmem>>, vector<64x256xbf16>
    %5 = arith.extf %4 : vector<64x256xbf16> to vector<64x256xf32>
    %c0_5 = arith.constant 0 : index
    %c0_6 = arith.constant 0 : index
    %6 = vector.load %arg3[%c0_5, %c0_6] : memref<64x16xf32, #tpu.memory_space<vmem>>, vector<64x16xf32>
    %c0_7 = arith.constant 0 : index
    %c0_8 = arith.constant 0 : index
    %7 = vector.load %arg5[%c0_7, %c0_8] : memref<16x128xf32, #tpu.memory_space<vmem>>, vector<16x128xf32>
    %cst = arith.constant dense<0.000000e+00> : vector<64x128xf32>
    %8 = tpu.matmul %6, %7, %cst {dimension_numbers = #tpu.dot_dimension_numbers<[1], [0], [0], [1], [0, 0, 1, 1], [], []>} : vector<64x16xf32>, vector<16x128xf32>, vector<64x128xf32> -> vector<64x128xf32>
    %cst_9 = arith.constant dense<0.000000e+00> : vector<256x128xf32>
    %9 = tpu.matmul %1, %8, %cst_9 {dimension_numbers = #tpu.dot_dimension_numbers<[1], [0], [0], [1], [0, 0, 1, 1], [], []>} : vector<256x64xf32>, vector<64x128xf32>, vector<256x128xf32> -> vector<256x128xf32>
    %c0_10 = arith.constant 0 : index
    %c0_11 = arith.constant 0 : index
    %10 = vector.load %arg4[%c0_10, %c0_11] : memref<256x16xf32, #tpu.memory_space<vmem>>, vector<256x16xf32>
    %c0_12 = arith.constant 0 : index
    %c0_13 = arith.constant 0 : index
    %11 = vector.load %arg6[%c0_12, %c0_13] : memref<16x128xf32, #tpu.memory_space<vmem>>, vector<16x128xf32>
    %cst_14 = arith.constant dense<0.000000e+00> : vector<256x128xf32>
    %12 = tpu.matmul %10, %11, %cst_14 {dimension_numbers = #tpu.dot_dimension_numbers<[1], [0], [0], [1], [0, 0, 1, 1], [], []>} : vector<256x16xf32>, vector<16x128xf32>, vector<256x128xf32> -> vector<256x128xf32>
    %13 = arith.addf %9, %12 : vector<256x128xf32>
    %cst_15 = arith.constant 0.000000e+00 : f32
    %14 = vector.broadcast %cst_15 : f32 to vector<256x128xf32>
    %15 = arith.maximumf %13, %14 : vector<256x128xf32>
    %c0_16 = arith.constant 0 : index
    %c0_17 = arith.constant 0 : index
    %16 = vector.load %arg7[%c0_16, %c0_17] : memref<128x128xf32, #tpu.memory_space<vmem>>, vector<128x128xf32>
    %c0_i32 = arith.constant 0 : i32
    %cst_18 = arith.constant dense<0.000000e+00> : vector<256x128xf32>
    %17 = tpu.matmul %3, %15, %cst_18 {dimension_numbers = #tpu.dot_dimension_numbers<[1], [0], [0], [1], [0, 0, 1, 1], [], []>} : vector<256x256xf32>, vector<256x128xf32>, vector<256x128xf32> -> vector<256x128xf32>
    %cst_19 = arith.constant dense<0.000000e+00> : vector<256x128xf32>
    %18 = tpu.matmul %17, %16, %cst_19 {dimension_numbers = #tpu.dot_dimension_numbers<[1], [0], [0], [1], [0, 0, 1, 1], [], []>} : vector<256x128xf32>, vector<128x128xf32>, vector<256x128xf32> -> vector<256x128xf32>
    %19 = arith.addf %13, %18 : vector<256x128xf32>
    %cst_20 = arith.constant 0.000000e+00 : f32
    %20 = vector.broadcast %cst_20 : f32 to vector<256x128xf32>
    %21 = arith.maximumf %19, %20 : vector<256x128xf32>
    %c1_i32 = arith.constant 1 : i32
    %cst_21 = arith.constant dense<0.000000e+00> : vector<256x128xf32>
    %22 = tpu.matmul %3, %21, %cst_21 {dimension_numbers = #tpu.dot_dimension_numbers<[1], [0], [0], [1], [0, 0, 1, 1], [], []>} : vector<256x256xf32>, vector<256x128xf32>, vector<256x128xf32> -> vector<256x128xf32>
    %cst_22 = arith.constant dense<0.000000e+00> : vector<256x128xf32>
    %23 = tpu.matmul %22, %16, %cst_22 {dimension_numbers = #tpu.dot_dimension_numbers<[1], [0], [0], [1], [0, 0, 1, 1], [], []>} : vector<256x128xf32>, vector<128x128xf32>, vector<256x128xf32> -> vector<256x128xf32>
    %24 = arith.addf %13, %23 : vector<256x128xf32>
    %cst_23 = arith.constant 0.000000e+00 : f32
    %25 = vector.broadcast %cst_23 : f32 to vector<256x128xf32>
    %26 = arith.maximumf %24, %25 : vector<256x128xf32>
    %c2_i32 = arith.constant 2 : i32
    %cst_24 = arith.constant dense<0.000000e+00> : vector<256x128xf32>
    %27 = tpu.matmul %3, %26, %cst_24 {dimension_numbers = #tpu.dot_dimension_numbers<[1], [0], [0], [1], [0, 0, 1, 1], [], []>} : vector<256x256xf32>, vector<256x128xf32>, vector<256x128xf32> -> vector<256x128xf32>
    %cst_25 = arith.constant dense<0.000000e+00> : vector<256x128xf32>
    %28 = tpu.matmul %27, %16, %cst_25 {dimension_numbers = #tpu.dot_dimension_numbers<[1], [0], [0], [1], [0, 0, 1, 1], [], []>} : vector<256x128xf32>, vector<128x128xf32>, vector<256x128xf32> -> vector<256x128xf32>
    %29 = arith.addf %13, %28 : vector<256x128xf32>
    %cst_26 = arith.constant 0.000000e+00 : f32
    %30 = vector.broadcast %cst_26 : f32 to vector<256x128xf32>
    %31 = arith.maximumf %29, %30 : vector<256x128xf32>
    %cst_27 = arith.constant dense<0.000000e+00> : vector<64x128xf32>
    %32 = tpu.matmul %5, %31, %cst_27 {dimension_numbers = #tpu.dot_dimension_numbers<[1], [0], [0], [1], [0, 0, 1, 1], [], []>} : vector<64x256xf32>, vector<256x128xf32>, vector<64x128xf32> -> vector<64x128xf32>
    %c0_28 = arith.constant 0 : index
    %c0_29 = arith.constant 0 : index
    %33 = vector.load %arg8[%c0_28, %c0_29] : memref<64x128xf32, #tpu.memory_space<vmem>>, vector<64x128xf32>
    tpu.vector_store %arg8[%c0_28, %c0_29], %32 {strides = array<i32>} : memref<64x128xf32, #tpu.memory_space<vmem>>, vector<64x128xf32>,
    return
  }
}

</mosaic_0001>

<bundles_post_ra>
// kernel: tpu_custom_call.1
= control target key start
LH: loop header
LB: loop body
LE: loop exit
PB: predicated region body
PF: predicated region fallthrough
CT: control target
= control target key end

     0   :  { %vm224_vm0 = vcmask 130048   ;;  %s5076_s0 = inlined_call_operand.vmem [shape: bf16[256,64], index: 0, kind: input, shape index: {}]   ;;  %s5077_s1 = inlined_call_operand.vmem [shape: bf16[256,256], index: 1, kind: input, shape index: {}]   ;;  %s5078_s2 = inlined_call_operand.vmem [shape: bf16[64,256], index: 2, kind: input, shape index: {}]   ;;  %s5079_s3 = inlined_call_operand.vmem [shape: f32[64,16], index: 3, kind: input, shape index: {}]   ;;  %s5080_s4 = inlined_call_operand.vmem [shape: f32[256,16], index: 4, kind: input, shape index: {}]   ;;  %s5081_s5 = inlined_call_operand.vmem [shape: f32[16,128], index: 5, kind: input, shape index: {}]   ;;  %s5082_s6 = inlined_call_operand.vmem [shape: f32[16,128], index: 6, kind: input, shape index: {}]   ;;  %s5083_s7 = inlined_call_operand.vmem [shape: f32[128,128], index: 7, kind: input, shape index: {}]   ;;  %s5084_s8 = inlined_call_operand.hbm [shape: f32[64,128], index: 8, kind: output, shape index: {}]  }
   0x1   :  { %v222_v0 = vld [vmem:[%s5081_s5] sm:$0xff]  ;;  %v223_v1 = vld [vmem:[%s5081_s5 + $0x8] sm:$0xff]  ;;  %v216_v9 = vld [vmem:[%s5079_s3 + $0x10] sm:$0xff] }
   0x2   :  { %v214_v2 = vld [vmem:[%s5079_s3] sm:$0xff]  ;;  %v3557_v3 = vpack.c.bf16 %v223_v1, %v222_v0  ;;  %v387_v5 = vld [vmem:[%s5082_s6 + $0x8] sm:$0xff]  ;;  %v217_v11 = vld [vmem:[%s5079_s3 + $0x18] sm:$0xff] }
   0x3   :  { %3189 = vmatprep.mubr.msk.f32.mxu0 %vm224_vm0, %v214_v2  ;;  %v386_v4 = vld [vmem:[%s5082_s6] sm:$0xff]  ;;  %v215_v6 = vld [vmem:[%s5079_s3 + $0x8] sm:$0xff]  ;;  %v356_v12 = vld [vmem:[%s5080_s4 + $0x10] sm:$0xff] }
   0x4   :  { %3558 = vmatprep.subr.bf16.mxu0 %v3557_v3  ;;  %v3561_v7 = vpack.c.bf16 %v387_v5, %v386_v4  ;;  %v354_v8 = vld [vmem:[%s5080_s4] sm:$0xff]  ;;  %v355_v10 = vld [vmem:[%s5080_s4 + $0x8] sm:$0xff]  ;;  %v357_v14 = vld [vmem:[%s5080_s4 + $0x18] sm:$0xff] }
   0x5   :  { %3560 = vmatpush3.bf16.msra.mxu0 %v3557_v3  ;;  %3205 = vmatprep.mubr.msk.f32.mxu1 %vm224_vm0, %v354_v8  ;;  %v218_v13 = vld [vmem:[%s5079_s3 + $0x20] sm:$0xff] }
   0x6   :  { %3562 = vmatprep.subr.bf16.mxu1 %v3561_v7 }
   0x7   :  { %3564 = vmatpush3.bf16.msra.mxu1 %v3561_v7 }
   0x8   :  { %3190 = vmatmul.mubr.msk.f32.vlgmr.msra.gmra.mrb[0].mxu0 %vm224_vm0, %v215_v6 }
   0x9   :  { %3192 = vmatprep.mubr.msk.f32.mxu0 %vm224_vm0, %v216_v9 }
   0xa   :  { %3206 = vmatmul.mubr.msk.f32.vlgmr.msra.gmra.mrb[0].mxu1 %vm224_vm0, %v355_v10 }
   0xb   :  { %3208 = vmatprep.mubr.msk.f32.mxu1 %vm224_vm0, %v356_v12 }
   0xc   :  { %3193 = vmatmul.mubr.msk.f32.gmra.mrb[2].mxu0 %vm224_vm0, %v217_v11 }
   0xd   :  { %13 = vsyncpa [#allocation3], 0  ;;  %3195 = vmatprep.mubr.msk.f32.mxu0 %vm224_vm0, %v218_v13  ;;  %v219_v15 = vld [vmem:[%s5079_s3 + $0x28] sm:$0xff]  ;;  %v358_v16 = vld [vmem:[%s5080_s4 + $0x20] sm:$0xff]  ;;  %vm709_vm1 = vcmask 523264  }
   0xe   :  { %v220_v17 = vld [vmem:[%s5079_s3 + $0x30] sm:$0xff]  ;;  %3209 = vmatmul.mubr.msk.f32.gmra.mrb[2].mxu1 %vm224_vm0, %v357_v14  ;;  %v359_v18 = vld [vmem:[%s5080_s4 + $0x28] sm:$0xff]  ;;  %v221_v19 = vld [vmem:[%s5079_s3 + $0x38] sm:$0xff] }
   0xf   :  { %3211 = vmatprep.mubr.msk.f32.mxu1 %vm224_vm0, %v358_v16  ;;  %v360_v20 = vld [vmem:[%s5080_s4 + $0x30] sm:$0xff]  ;;  %v361_v21 = vld [vmem:[%s5080_s4 + $0x38] sm:$0xff]  ;;  %v362_v22 = vld [vmem:[%s5080_s4 + $0x40] sm:$0xff] }
  0x10   :  { %3196 = vmatmul.mubr.msk.f32.gmra.mrb[4].mxu0 %vm224_vm0, %v219_v15  ;;  %v363_v23 = vld [vmem:[%s5080_s4 + $0x48] sm:$0xff]  ;;  %v364_v24 = vld [vmem:[%s5080_s4 + $0x50] sm:$0xff]  ;;  %v365_v25 = vld [vmem:[%s5080_s4 + $0x58] sm:$0xff] }
  0x11   :  { %3198 = vmatprep.mubr.msk.f32.mxu0 %vm224_vm0, %v220_v17  ;;  %v366_v26 = vld [vmem:[%s5080_s4 + $0x60] sm:$0xff]  ;;  %v367_v27 = vld [vmem:[%s5080_s4 + $0x68] sm:$0xff]  ;;  %v368_v28 = vld [vmem:[%s5080_s4 + $0x70] sm:$0xff] }
  0x12   :  { %3212 = vmatmul.mubr.msk.f32.gmra.mrb[4].mxu1 %vm224_vm0, %v359_v18  ;;  %v369_v29 = vld [vmem:[%s5080_s4 + $0x78] sm:$0xff]  ;;  %v370_v30 = vld [vmem:[%s5080_s4 + $0x80] sm:$0xff]  ;;  %v371_v31 = vld [vmem:[%s5080_s4 + $0x88] sm:$0xff] }
  0x13   :  { %3214 = vmatprep.mubr.msk.f32.mxu1 %vm224_vm0, %v360_v20  ;;  %v372_v32 = vld [vmem:[%s5080_s4 + $0x90] sm:$0xff]  ;;  %v373_v33 = vld [vmem:[%s5080_s4 + $0x98] sm:$0xff]  ;;  %v374_v34 = vld [vmem:[%s5080_s4 + $0xa0] sm:$0xff] }
  0x14   :  { %3199 = vmatmul.mubr.msk.f32.gmra.mrb[6].mxu0 %vm224_vm0, %v221_v19  ;;  %v375_v35 = vld [vmem:[%s5080_s4 + $0xa8] sm:$0xff]  ;;  %v376_v36 = vld [vmem:[%s5080_s4 + $0xb0] sm:$0xff]  ;;  %v377_v37 = vld [vmem:[%s5080_s4 + $0xb8] sm:$0xff] }
  0x15   :  { %v378_v38 = vld [vmem:[%s5080_s4 + $0xc0] sm:$0xff]  ;;  %v379_v39 = vld [vmem:[%s5080_s4 + $0xc8] sm:$0xff]  ;;  %v380_v40 = vld [vmem:[%s5080_s4 + $0xd0] sm:$0xff] }
  0x16   :  { %3215 = vmatmul.mubr.msk.f32.gmra.mrb[6].mxu1 %vm224_vm0, %v361_v21  ;;  %v381_v41 = vld [vmem:[%s5080_s4 + $0xd8] sm:$0xff]  ;;  %v382_v42 = vld [vmem:[%s5080_s4 + $0xe0] sm:$0xff]  ;;  %v383_v43 = vld [vmem:[%s5080_s4 + $0xe8] sm:$0xff] }
  0x17   :  { %3217 = vmatprep.mubr.msk.f32.mxu1 %vm224_vm0, %v362_v22  ;;  %v384_v44 = vld [vmem:[%s5080_s4 + $0xf0] sm:$0xff]  ;;  %v385_v45 = vld [vmem:[%s5080_s4 + $0xf8] sm:$0xff]  ;;  %v2823_v46 = vld [vmem:[%s5076_s0] sm:$0xff]  }
  0x18   :  { %v2824_v47 = vunpack.c.l.bf16 %v2823_v46  ;;  %v2886_v60 = vld [vmem:[%s5076_s0 + $0x8] sm:$0xff]   ;;  %v2825_v61 = vunpack.c.h.bf16 %v2823_v46  ;;  %v2887_v63 = vld [vmem:[%s5076_s0 + $0x10] sm:$0xff]   ;;  %v2888_v2 = vld [vmem:[%s5076_s0 + $0x18] sm:$0xff]  }
  0x19   :  { %v2828_v62 = vunpack.c.l.bf16 %v2886_v60  ;;  %v2829_v0 = vunpack.c.h.bf16 %v2886_v60  ;;  %v2832_v1 = vunpack.c.l.bf16 %v2887_v63  ;;  %v2833_v3 = vunpack.c.h.bf16 %v2887_v63  ;;  %v2889_v5 = vld [vmem:[%s5076_s0 + $0x20] sm:$0xff]   ;;  %v2890_v8 = vld [vmem:[%s5076_s0 + $0x28] sm:$0xff]   ;;  %v2891_v11 = vld [vmem:[%s5076_s0 + $0x30] sm:$0xff]  }
  0x1a   :  { %3218 = vmatmul.mubr.msk.f32.gmra.mrb[8].mxu1 %vm224_vm0, %v363_v23  ;;  %v2836_v4 = vunpack.c.l.bf16 %v2888_v2  ;;  %v2837_v6 = vunpack.c.h.bf16 %v2888_v2  ;;  %v2840_v7 = vunpack.c.l.bf16 %v2889_v5  ;;  %v2841_v9 = vunpack.c.h.bf16 %v2889_v5  ;;  %v2892_v14 = vld [vmem:[%s5076_s0 + $0x38] sm:$0xff]   ;;  %v2893_v17 = vld [vmem:[%s5076_s0 + $0x40] sm:$0xff]   ;;  %v2894_v20 = vld [vmem:[%s5076_s0 + $0x48] sm:$0xff]  }
  0x1b   :  { %3220 = vmatprep.mubr.msk.f32.mxu1 %vm224_vm0, %v364_v24  ;;  %v2844_v10 = vunpack.c.l.bf16 %v2890_v8  ;;  %v2845_v12 = vunpack.c.h.bf16 %v2890_v8  ;;  %v2848_v13 = vunpack.c.l.bf16 %v2891_v11  ;;  %v2849_v15 = vunpack.c.h.bf16 %v2891_v11  ;;  %v2895_v23 = vld [vmem:[%s5076_s0 + $0x50] sm:$0xff]  }
  0x1c   :  { %v2852_v16 = vunpack.c.l.bf16 %v2892_v14  ;;  %v2853_v18 = vunpack.c.h.bf16 %v2892_v14  ;;  %v2856_v19 = vunpack.c.l.bf16 %v2893_v17  ;;  %v2857_v21 = vunpack.c.h.bf16 %v2893_v17 }
  0x1d   :  { %v2860_v22 = vunpack.c.l.bf16 %v2894_v20  ;;  %v2861_v24 = vunpack.c.h.bf16 %v2894_v20 }
  0x1e   :  { %3221 = vmatmul.mubr.msk.f32.gmra.mrb[10].mxu1 %vm224_vm0, %v365_v25  ;;  %v2864_v25 = vunpack.c.l.bf16 %v2895_v23 }
  0x1f   :  { %3223 = vmatprep.mubr.msk.f32.mxu1 %vm224_vm0, %v366_v26  ;;  %v2896_v26 = vld [vmem:[%s5076_s0 + $0x58] sm:$0xff]  }
  0x22   :  { %3224 = vmatmul.mubr.msk.f32.gmra.mrb[12].mxu1 %vm224_vm0, %v367_v27  ;;  %v2865_v27 = vunpack.c.h.bf16 %v2895_v23 }
  0x23   :  { %3226 = vmatprep.mubr.msk.f32.mxu1 %vm224_vm0, %v368_v28  ;;  %v2868_v28 = vunpack.c.l.bf16 %v2896_v26 }
  0x26   :  { %3227 = vmatmul.mubr.msk.f32.gmra.mrb[14].mxu1 %vm224_vm0, %v369_v29  ;;  %v2897_v29 = vld [vmem:[%s5076_s0 + $0x60] sm:$0xff]  }
  0x27   :  { %3229 = vmatprep.mubr.msk.f32.mxu1 %vm224_vm0, %v370_v30  ;;  %v2869_v30 = vunpack.c.h.bf16 %v2896_v26 }
  0x2a   :  { %3230 = vmatmul.mubr.msk.f32.gmra.mrb[16].mxu1 %vm224_vm0, %v371_v31  ;;  %v2872_v31 = vunpack.c.l.bf16 %v2897_v29 }
  0x2b   :  { %3232 = vmatprep.mubr.msk.f32.mxu1 %vm224_vm0, %v372_v32  ;;  %v2898_v32 = vld [vmem:[%s5076_s0 + $0x68] sm:$0xff]  }
  0x2e   :  { %3233 = vmatmul.mubr.msk.f32.gmra.mrb[18].mxu1 %vm224_vm0, %v373_v33  ;;  %v2873_v33 = vunpack.c.h.bf16 %v2897_v29 }
  0x2f   :  { %3235 = vmatprep.mubr.msk.f32.mxu1 %vm224_vm0, %v374_v34  ;;  %v2876_v34 = vunpack.c.l.bf16 %v2898_v32 }
  0x32   :  { %3236 = vmatmul.mubr.msk.f32.gmra.mrb[20].mxu1 %vm224_vm0, %v375_v35  ;;  %v2899_v35 = vld [vmem:[%s5076_s0 + $0x70] sm:$0xff]  }
  0x33   :  { %3238 = vmatprep.mubr.msk.f32.mxu1 %vm224_vm0, %v376_v36  ;;  %v2877_v36 = vunpack.c.h.bf16 %v2898_v32 }
  0x36   :  { %3239 = vmatmul.mubr.msk.f32.gmra.mrb[22].mxu1 %vm224_vm0, %v377_v37  ;;  %v2880_v37 = vunpack.c.l.bf16 %v2899_v35 }
  0x37   :  { %3241 = vmatprep.mubr.msk.f32.mxu1 %vm224_vm0, %v378_v38  ;;  %v2900_v38 = vld [vmem:[%s5076_s0 + $0x78] sm:$0xff]  }
  0x3a   :  { %3242 = vmatmul.mubr.msk.f32.gmra.mrb[24].mxu1 %vm224_vm0, %v379_v39  ;;  %v2881_v39 = vunpack.c.h.bf16 %v2899_v35 }
  0x3b   :  { %3244 = vmatprep.mubr.msk.f32.mxu1 %vm224_vm0, %v380_v40  ;;  %v2884_v40 = vunpack.c.l.bf16 %v2900_v38 }
  0x3e   :  { %3245 = vmatmul.mubr.msk.f32.gmra.mrb[26].mxu1 %vm224_vm0, %v381_v41  ;;  %v2885_v41 = vunpack.c.h.bf16 %v2900_v38 }
  0x3f   :  { %3247 = vmatprep.mubr.msk.f32.mxu1 %vm224_vm0, %v382_v42  ;;  %v5085_v42 = vmov 0.0|0.0  }
  0x40   :  { %3581 = vmatprep.subr.bf16.mxu0 %v5085_v42 }
  0x42   :  { %3248 = vmatmul.mubr.msk.f32.gmra.mrb[28].mxu1 %vm224_vm0, %v383_v43  ;;  %v4234_v43 = vld [vmem:[%s5077_s1] sm:$0xff] }
  0x43   :  { %3250 = vmatprep.mubr.msk.f32.mxu1 %vm224_vm0, %v384_v44  ;;  %v4237_v44 = vunpack.c.h.bf16 %v4234_v43 }
  0x45   :  { %5200 = vst [vmem:[#allocation5_spill] sm:$0xff] %v4237_v44  ;;  %1143 = vmatprep.mubr.f32.mxu0 %v4237_v44 }
  0x46   :  { %3251 = vmatmul.mubr.msk.f32.gmra.mrb[30].mxu1 %vm224_vm0, %v385_v45 }
  0x47   :  { %3269 = vmatprep.mubr.msk.f32.mxu1 %vm709_vm1, %v2824_v47 }
  0xdb   :  { %v3191_v48 = vpop.f32.mrb[0].mxu0 }
  0xdc   :  { %v315_v49 = vpop.f32.mrb[1].mxu0 }
  0xdd   :  { %v3565_v50 = vpack.c.bf16 %v3191_v48, %v315_v49 }
  0xdf   :  { %v3194_v51 = vpop.f32.mrb[2].mxu0  ;;  %3566 = vmatprep.subr.bf16.mxu1 %v3565_v50 }
  0xe0   :  { %v325_v52 = vpop.f32.mrb[3].mxu0  ;;  %3568 = vmatpush3.bf16.msra.mxu1 %v3565_v50 }
  0xe1   :  { %v3569_v53 = vpack.c.bf16 %v3194_v51, %v325_v52 }
  0xe3   :  { %v3197_v54 = vpop.f32.mrb[4].mxu0  ;;  %3570 = vmatprep.subr.bf16.mxu1 %v3569_v53 }
  0xe4   :  { %v335_v55 = vpop.f32.mrb[5].mxu0  ;;  %3572 = vmatpush3.bf16.msra.mxu1 %v3569_v53 }
  0xe5   :  { %v3573_v56 = vpack.c.bf16 %v3197_v54, %v335_v55 }
  0xe7   :  { %v3200_v57 = vpop.f32.mrb[6].mxu0  ;;  %3574 = vmatprep.subr.bf16.mxu1 %v3573_v56 }
  0xe8   :  { %v345_v58 = vpop.f32.mrb[7].mxu0  ;;  %3576 = vmatpush3.bf16.msra.mxu1 %v3573_v56 }
  0xe9   :  { %v3577_v59 = vpack.c.bf16 %v3200_v57, %v345_v58 }
  0xeb   :  { %3578 = vmatprep.subr.bf16.mxu1 %v3577_v59 }
  0xec   :  { %3580 = vmatpush3.bf16.msra.mxu1 %v3577_v59 }
  0xef   :  { %3270 = vmatmul.mubr.msk.f32.vlgmr.msra.gmra.mrb[0].mxu1 %vm709_vm1, %v2825_v61 }
  0xf0   :  { %3272 = vmatprep.mubr.msk.f32.mxu1 %vm709_vm1, %v2828_v62 }
  0xf3   :  { %3273 = vmatmul.mubr.msk.f32.gmra.mrb[2].mxu1 %vm709_vm1, %v2829_v0 }
  0xf4   :  { %3275 = vmatprep.mubr.msk.f32.mxu1 %vm709_vm1, %v2832_v1 }
  0xf7   :  { %3276 = vmatmul.mubr.msk.f32.gmra.mrb[4].mxu1 %vm709_vm1, %v2833_v3 }
  0xf8   :  { %3278 = vmatprep.mubr.msk.f32.mxu1 %vm709_vm1, %v2836_v4 }
  0xfb   :  { %3279 = vmatmul.mubr.msk.f32.gmra.mrb[6].mxu1 %vm709_vm1, %v2837_v6 }
  0xfc   :  { %3281 = vmatprep.mubr.msk.f32.mxu1 %vm709_vm1, %v2840_v7 }
  0xff   :  { %3282 = vmatmul.mubr.msk.f32.gmra.mrb[8].mxu1 %vm709_vm1, %v2841_v9 }
 0x100   :  { %3284 = vmatprep.mubr.msk.f32.mxu1 %vm709_vm1, %v2844_v10 }
 0x103   :  { %3285 = vmatmul.mubr.msk.f32.gmra.mrb[10].mxu1 %vm709_vm1, %v2845_v12 }
 0x104   :  { %3287 = vmatprep.mubr.msk.f32.mxu1 %vm709_vm1, %v2848_v13 }
 0x107   :  { %3288 = vmatmul.mubr.msk.f32.gmra.mrb[12].mxu1 %vm709_vm1, %v2849_v15 }
 0x108   :  { %3290 = vmatprep.mubr.msk.f32.mxu1 %vm709_vm1, %v2852_v16 }
 0x10b   :  { %3291 = vmatmul.mubr.msk.f32.gmra.mrb[14].mxu1 %vm709_vm1, %v2853_v18 }
 0x10c   :  { %3293 = vmatprep.mubr.msk.f32.mxu1 %vm709_vm1, %v2856_v19 }
 0x10f   :  { %3294 = vmatmul.mubr.msk.f32.gmra.mrb[16].mxu1 %vm709_vm1, %v2857_v21 }
 0x110   :  { %3296 = vmatprep.mubr.msk.f32.mxu1 %vm709_vm1, %v2860_v22 }
 0x113   :  { %3297 = vmatmul.mubr.msk.f32.gmra.mrb[18].mxu1 %vm709_vm1, %v2861_v24 }
 0x114   :  { %3299 = vmatprep.mubr.msk.f32.mxu1 %vm709_vm1, %v2864_v25 }
 0x117   :  { %3300 = vmatmul.mubr.msk.f32.gmra.mrb[20].mxu1 %vm709_vm1, %v2865_v27 }
 0x118   :  { %3302 = vmatprep.mubr.msk.f32.mxu1 %vm709_vm1, %v2868_v28 }
 0x11b   :  { %3303 = vmatmul.mubr.msk.f32.gmra.mrb[22].mxu1 %vm709_vm1, %v2869_v30 }
 0x11c   :  { %3305 = vmatprep.mubr.msk.f32.mxu1 %vm709_vm1, %v2872_v31 }
 0x11f   :  { %3306 = vmatmul.mubr.msk.f32.gmra.mrb[24].mxu1 %vm709_vm1, %v2873_v33 }
 0x120   :  { %3308 = vmatprep.mubr.msk.f32.mxu1 %vm709_vm1, %v2876_v34 }
 0x123   :  { %3309 = vmatmul.mubr.msk.f32.gmra.mrb[26].mxu1 %vm709_vm1, %v2877_v36 }
 0x124   :  { %3311 = vmatprep.mubr.msk.f32.mxu1 %vm709_vm1, %v2880_v37 }
 0x127   :  { %3312 = vmatmul.mubr.msk.f32.gmra.mrb[28].mxu1 %vm709_vm1, %v2881_v39 }
 0x128   :  { %3314 = vmatprep.mubr.msk.f32.mxu1 %vm709_vm1, %v2884_v40 }
 0x12b   :  { %3315 = vmatmul.mubr.msk.f32.gmra.mrb[30].mxu1 %vm709_vm1, %v2885_v41 }
 0x1c2   :  { %v4240_v45 = vpop.f32.mrb[0].mxu1 }
 0x1c3   :  { %v1032_v46 = vmax.f32 %v4240_v45, 0.0  ;;  %v4243_v47 = vpop.f32.mrb[1].mxu1 }
 0x1c4   :  { %v1031_v48 = vmax.f32 %v4243_v47, 0.0 }
 0x1c6   :  { %v4246_v49 = vpop.f32.mrb[2].mxu1  ;;  %v3582_v50 = vpack.c.bf16 %v1032_v46, %v1031_v48 }
 0x1c7   :  { %v1034_v51 = vmax.f32 %v4246_v49, 0.0  ;;  %v4249_v52 = vpop.f32.mrb[3].mxu1 }
 0x1c8   :  { %v1033_v53 = vmax.f32 %v4249_v52, 0.0  ;;  %3583 = vmatpush1.bf16.msra.mxu0 %v3582_v50 }
 0x1c9   :  { %3584 = vmatprep.subr.bf16.mxu0 %v5085_v42 }
 0x1ca   :  { %v4253_v54 = vpop.f32.mrb[4].mxu1  ;;  %v3585_v55 = vpack.c.bf16 %v1034_v51, %v1033_v53 }
 0x1cb   :  { %v1036_v56 = vmax.f32 %v4253_v54, 0.0  ;;  %v4256_v57 = vpop.f32.mrb[5].mxu1 }
 0x1cc   :  { %v1035_v58 = vmax.f32 %v4256_v57, 0.0  ;;  %3586 = vmatpush1.bf16.msra.mxu0 %v3585_v55 }
 0x1cd   :  { %3587 = vmatprep.subr.bf16.mxu0 %v5085_v42 }
 0x1ce   :  { %v4260_v59 = vpop.f32.mrb[6].mxu1  ;;  %v3588_v60 = vpack.c.bf16 %v1036_v56, %v1035_v58 }
 0x1cf   :  { %v1038_v61 = vmax.f32 %v4260_v59, 0.0  ;;  %v4263_v62 = vpop.f32.mrb[7].mxu1 }
 0x1d0   :  { %v1037_v63 = vmax.f32 %v4263_v62, 0.0  ;;  %3589 = vmatpush1.bf16.msra.mxu0 %v3588_v60 }
 0x1d1   :  { %3590 = vmatprep.subr.bf16.mxu0 %v5085_v42 }
 0x1d2   :  { %v4267_v0 = vpop.f32.mrb[8].mxu1  ;;  %v3591_v1 = vpack.c.bf16 %v1038_v61, %v1037_v63 }
 0x1d3   :  { %v1040_v2 = vmax.f32 %v4267_v0, 0.0  ;;  %v4270_v3 = vpop.f32.mrb[9].mxu1 }
 0x1d4   :  { %v1039_v4 = vmax.f32 %v4270_v3, 0.0  ;;  %3592 = vmatpush1.bf16.msra.mxu0 %v3591_v1 }
 0x1d5   :  { %3593 = vmatprep.subr.bf16.mxu0 %v5085_v42 }
 0x1d6   :  { %v4274_v5 = vpop.f32.mrb[10].mxu1  ;;  %v3594_v6 = vpack.c.bf16 %v1040_v2, %v1039_v4 }
 0x1d7   :  { %v1042_v7 = vmax.f32 %v4274_v5, 0.0  ;;  %v4277_v8 = vpop.f32.mrb[11].mxu1 }
 0x1d8   :  { %v1041_v9 = vmax.f32 %v4277_v8, 0.0  ;;  %3595 = vmatpush1.bf16.msra.mxu0 %v3594_v6 }
 0x1d9   :  { %3596 = vmatprep.subr.bf16.mxu0 %v5085_v42 }
 0x1da   :  { %v4281_v10 = vpop.f32.mrb[12].mxu1  ;;  %v3597_v11 = vpack.c.bf16 %v1042_v7, %v1041_v9 }
 0x1db   :  { %v1044_v12 = vmax.f32 %v4281_v10, 0.0  ;;  %v4284_v13 = vpop.f32.mrb[13].mxu1 }
 0x1dc   :  { %v1043_v14 = vmax.f32 %v4284_v13, 0.0  ;;  %3598 = vmatpush1.bf16.msra.mxu0 %v3597_v11 }
 0x1dd   :  { %3599 = vmatprep.subr.bf16.mxu0 %v5085_v42 }
 0x1de   :  { %v4288_v15 = vpop.f32.mrb[14].mxu1  ;;  %v3600_v16 = vpack.c.bf16 %v1044_v12, %v1043_v14  ;;  %v95_v12 = vld [vmem:[%s5077_s1 + $0x8] sm:$0xff] }
 0x1df   :  { %v1046_v17 = vmax.f32 %v4288_v15, 0.0  ;;  %v4291_v18 = vpop.f32.mrb[15].mxu1 }
 0x1e0   :  { %v1045_v19 = vmax.f32 %v4291_v18, 0.0  ;;  %3601 = vmatpush1.bf16.msra.mxu0 %v3600_v16  ;;  %v4355_v16 = vunpack.c.l.bf16 %v4234_v43  ;;  %v1066_v43 = vld [vmem:[%s5083_s7 + $0x18] sm:$0xff] }
 0x1e1   :  { %3602 = vmatprep.subr.bf16.mxu0 %v5085_v42 }
 0x1e2   :  { %v4295_v20 = vpop.f32.mrb[16].mxu1  ;;  %v3603_v21 = vpack.c.bf16 %v1046_v17, %v1045_v19  ;;  %v1063_v17 = vld [vmem:[%s5083_s7] sm:$0xff]  ;;  %v1064_v19 = vld [vmem:[%s5083_s7 + $0x8] sm:$0xff] }
 0x1e3   :  { %v1048_v22 = vmax.f32 %v4295_v20, 0.0  ;;  %v4298_v23 = vpop.f32.mrb[17].mxu1 }
 0x1e4   :  { %v1047_v24 = vmax.f32 %v4298_v23, 0.0  ;;  %3604 = vmatpush1.bf16.msra.mxu0 %v3603_v21  ;;  %v1065_v21 = vld [vmem:[%s5083_s7 + $0x10] sm:$0xff] }
 0x1e5   :  { %3605 = vmatprep.subr.bf16.mxu0 %v5085_v42 }
 0x1e6   :  { %v4302_v25 = vpop.f32.mrb[18].mxu1  ;;  %v3606_v26 = vpack.c.bf16 %v1048_v22, %v1047_v24  ;;  %v4366_v22 = vunpack.c.h.bf16 %v95_v12  ;;  %v4368_v24 = vpack.c.bf16 %v1064_v19, %v1063_v17 }
 0x1e7   :  { %v1050_v27 = vmax.f32 %v4302_v25, 0.0  ;;  %v4305_v28 = vpop.f32.mrb[19].mxu1 }
 0x1e8   :  { %v1049_v29 = vmax.f32 %v4305_v28, 0.0  ;;  %3607 = vmatpush1.bf16.msra.mxu0 %v3606_v26  ;;  %v96_v26 = vld [vmem:[%s5077_s1 + $0x10] sm:$0xff]  ;;  %3630 = vmatprep.subr.bf16.mxu1 %v4368_v24 }
 0x1e9   :  { %3608 = vmatprep.subr.bf16.mxu0 %v5085_v42  ;;  %3632 = vmatpush3.bf16.msra.mxu1 %v4368_v24 }
 0x1ea   :  { %v4309_v30 = vpop.f32.mrb[20].mxu1  ;;  %v3609_v31 = vpack.c.bf16 %v1050_v27, %v1049_v29  ;;  %v4376_v27 = vpack.c.bf16 %v1066_v43, %v1065_v21  ;;  %v1067_v29 = vld [vmem:[%s5083_s7 + $0x20] sm:$0xff]  ;;  %v100_v21 = vld [vmem:[%s5077_s1 + $0x30] sm:$0xff] }
 0x1eb   :  { %v1052_v32 = vmax.f32 %v4309_v30, 0.0  ;;  %v4312_v33 = vpop.f32.mrb[21].mxu1  ;;  %v1075_v43 = vld [vmem:[%s5083_s7 + $0x60] sm:$0xff] }
 0x1ec   :  { %v1051_v34 = vmax.f32 %v4312_v33, 0.0  ;;  %3610 = vmatpush1.bf16.msra.mxu0 %v3609_v31  ;;  %v1068_v31 = vld [vmem:[%s5083_s7 + $0x28] sm:$0xff]  ;;  %3634 = vmatprep.subr.bf16.mxu1 %v4376_v27 }
 0x1ed   :  { %3611 = vmatprep.subr.bf16.mxu0 %v5085_v42  ;;  %3636 = vmatpush3.bf16.msra.mxu1 %v4376_v27 }
 0x1ee   :  { %v4316_v35 = vpop.f32.mrb[22].mxu1  ;;  %v3612_v36 = vpack.c.bf16 %v1052_v32, %v1051_v34  ;;  %v4387_v32 = vunpack.c.l.bf16 %v95_v12  ;;  %v4391_v34 = vunpack.c.h.bf16 %v96_v26  ;;  %v1074_v12 = vld [vmem:[%s5083_s7 + $0x58] sm:$0xff] }
 0x1ef   :  { %v1054_v37 = vmax.f32 %v4316_v35, 0.0  ;;  %v4319_v38 = vpop.f32.mrb[23].mxu1 }
 0x1f0   :  { %v1053_v39 = vmax.f32 %v4319_v38, 0.0  ;;  %3613 = vmatpush1.bf16.msra.mxu0 %v3612_v36  ;;  %v4394_v36 = vpack.c.bf16 %v1068_v31, %v1067_v29  ;;  %v4467_v31 = vunpack.c.h.bf16 %v100_v21 }
 0x1f1   :  { %3614 = vmatprep.subr.bf16.mxu0 %v5085_v42 }
 0x1f2   :  { %v4323_v40 = vpop.f32.mrb[24].mxu1  ;;  %v3615_v41 = vpack.c.bf16 %v1054_v37, %v1053_v39  ;;  %v97_v37 = vld [vmem:[%s5077_s1 + $0x18] sm:$0xff]  ;;  %v1069_v39 = vld [vmem:[%s5083_s7 + $0x30] sm:$0xff]  ;;  %3638 = vmatprep.subr.bf16.mxu1 %v4394_v36  ;;  %5202 = vst [vmem:[#allocation7_spill] sm:$0xff] %v4467_v31 }
 0x1f3   :  { %v1056_v46 = vmax.f32 %v4323_v40, 0.0  ;;  %v4326_v48 = vpop.f32.mrb[25].mxu1  ;;  %3640 = vmatpush3.bf16.msra.mxu1 %v4394_v36 }
 0x1f4   :  { %v1055_v50 = vmax.f32 %v4326_v48, 0.0  ;;  %3616 = vmatpush1.bf16.msra.mxu0 %v3615_v41  ;;  %v1070_v41 = vld [vmem:[%s5083_s7 + $0x38] sm:$0xff] }
 0x1f5   :  { %3617 = vmatprep.subr.bf16.mxu0 %v5085_v42 }
 0x1f6   :  { %v4330_v51 = vpop.f32.mrb[26].mxu1  ;;  %v3618_v53 = vpack.c.bf16 %v1056_v46, %v1055_v50  ;;  %v4406_v46 = vunpack.c.l.bf16 %v96_v26  ;;  %v4410_v50 = vunpack.c.h.bf16 %v97_v37  ;;  %v1076_v26 = vld [vmem:[%s5083_s7 + $0x68] sm:$0xff] }
 0x1f7   :  { %v1058_v55 = vmax.f32 %v4330_v51, 0.0  ;;  %v4333_v56 = vpop.f32.mrb[27].mxu1 }
 0x1f8   :  { %v1057_v58 = vmax.f32 %v4333_v56, 0.0  ;;  %3619 = vmatpush1.bf16.msra.mxu0 %v3618_v53  ;;  %v4413_v53 = vpack.c.bf16 %v1070_v41, %v1069_v39  ;;  %v101_v39 = vld [vmem:[%s5077_s1 + $0x38] sm:$0xff]  ;;  %v1077_v41 = vld [vmem:[%s5083_s7 + $0x70] sm:$0xff] }
 0x1f9   :  { %3620 = vmatprep.subr.bf16.mxu0 %v5085_v42 }
 0x1fa   :  { %v4337_v60 = vpop.f32.mrb[28].mxu1  ;;  %v3621_v61 = vpack.c.bf16 %v1058_v55, %v1057_v58  ;;  %v98_v55 = vld [vmem:[%s5077_s1 + $0x20] sm:$0xff]  ;;  %3642 = vmatprep.subr.bf16.mxu1 %v4413_v53 }
 0x1fb   :  { %v1060_v63 = vmax.f32 %v4337_v60, 0.0  ;;  %v4340_v1 = vpop.f32.mrb[29].mxu1  ;;  %v1071_v58 = vld [vmem:[%s5083_s7 + $0x40] sm:$0xff]  ;;  %3644 = vmatpush3.bf16.msra.mxu1 %v4413_v53 }
 0x1fc   :  { %v1059_v2 = vmax.f32 %v4340_v1, 0.0  ;;  %3622 = vmatpush1.bf16.msra.mxu0 %v3621_v61  ;;  %v1072_v61 = vld [vmem:[%s5083_s7 + $0x48] sm:$0xff] }
 0x1fd   :  { %3623 = vmatprep.subr.bf16.mxu0 %v5085_v42 }
 0x1fe   :  { %v4344_v4 = vpop.f32.mrb[30].mxu1  ;;  %v3624_v6 = vpack.c.bf16 %v1060_v63, %v1059_v2  ;;  %v4425_v63 = vunpack.c.l.bf16 %v97_v37  ;;  %v4429_v2 = vunpack.c.h.bf16 %v98_v55  ;;  %v4470_v37 = vpack.c.bf16 %v1076_v26, %v1075_v43  ;;  %v103_v43 = vld [vmem:[%s5077_s1 + $0x48] sm:$0xff] }
 0x1ff   :  { %v1062_v7 = vmax.f32 %v4344_v4, 0.0  ;;  %v4347_v9 = vpop.f32.mrb[31].mxu1 }
 0x200   :  { %v1061_v11 = vmax.f32 %v4347_v9, 0.0  ;;  %3625 = vmatpush1.bf16.msra.mxu0 %v3624_v6  ;;  %v4432_v6 = vpack.c.bf16 %v1072_v61, %v1071_v58  ;;  %5203 = vst [vmem:[#allocation8_spill] sm:$0xff] %v4470_v37  ;;  %v4482_v58 = vunpack.c.l.bf16 %v100_v21  ;;  %v4486_v61 = vunpack.c.h.bf16 %v101_v39 }
 0x201   :  { %3626 = vmatprep.subr.bf16.mxu0 %v5085_v42 }
 0x202   :  { %v3627_v14 = vpack.c.bf16 %v1062_v7, %v1061_v11  ;;  %v99_v7 = vld [vmem:[%s5077_s1 + $0x28] sm:$0xff]  ;;  %v1073_v11 = vld [vmem:[%s5083_s7 + $0x50] sm:$0xff]  ;;  %3646 = vmatprep.subr.bf16.mxu1 %v4432_v6  ;;  %5204 = vst [vmem:[#allocation9_spill] sm:$0xff] %v4482_v58  ;;  %5205 = vst [vmem:[#allocation10_spill] sm:$0xff] %v4486_v61 }
 0x203   :  { %v4448_v17 = vunpack.c.h.bf16 %v99_v7  ;;  %v4451_v19 = vpack.c.bf16 %v1074_v12, %v1073_v11  ;;  %v4463_v29 = vunpack.c.l.bf16 %v99_v7  ;;  %3648 = vmatpush3.bf16.msra.mxu1 %v4432_v6  ;;  %v102_v11 = vld [vmem:[%s5077_s1 + $0x40] sm:$0xff]  ;;  %v4495_v12 = vunpack.c.l.bf16 %v101_v39 }
 0x204   :  { %3628 = vmatpush1.bf16.msra.mxu0 %v3627_v14  ;;  %v4444_v14 = vunpack.c.l.bf16 %v98_v55  ;;  %v1078_v55 = vld [vmem:[%s5083_s7 + $0x78] sm:$0xff]  ;;  %v4499_v21 = vunpack.c.h.bf16 %v102_v11  ;;  %v4506_v26 = vunpack.c.l.bf16 %v102_v11  ;;  %v4510_v39 = vunpack.c.h.bf16 %v103_v43 }
 0x205   :  { %3661 = vmatprep.subr.bf16.mxu0 %v5085_v42  ;;  %5201 = vst [vmem:[#allocation6_spill] sm:$0xff] %v4463_v29  ;;  %3650 = vmatprep.subr.bf16.mxu1 %v4451_v19  ;;  %v4489_v7 = vpack.c.bf16 %v1078_v55, %v1077_v41  ;;  %5207 = vst [vmem:[#allocation12_spill] sm:$0xff] %v4495_v12  ;;  %v104_v41 = vld [vmem:[%s5077_s1 + $0x50] sm:$0xff]  ;;  %v4517_v55 = vunpack.c.l.bf16 %v103_v43  ;;  %v105_v42 = vld [vmem:[%s5077_s1 + $0x58] sm:$0xff] }
 0x206   :  { %5208 = vst [vmem:[#allocation13_spill] sm:$0xff] %v4499_v21  ;;  %5209 = vst [vmem:[#allocation14_spill] sm:$0xff] %v4506_v26  ;;  %v4520_v11 = vunpack.c.h.bf16 %v104_v41  ;;  %v106_v43 = vld [vmem:[%s5077_s1 + $0x60] sm:$0xff] }
 0x207   :  { %1144 = vmatmul.mubr.f32.vlgmr.msra.gmra.mrb[8].mxu0 %v4355_v16  ;;  %3652 = vmatpush3.bf16.msra.mxu1 %v4451_v19  ;;  %5206 = vst [vmem:[#allocation11_spill] sm:$0xff] %v4489_v7  ;;  %5210 = vst [vmem:[#allocation15_spill] sm:$0xff] %v4510_v39 }
 0x208   :  { %1148 = vmatprep.mubr.f32.mxu0 %v4366_v22  ;;  %3654 = vmatprep.subr.bf16.mxu1 %v4470_v37  ;;  %5211 = vst [vmem:[#allocation16_spill] sm:$0xff] %v4517_v55  ;;  %5212 = vst [vmem:[#allocation17_spill] sm:$0xff] %v4520_v11 }
 0x20b   :  { %1149 = vmatmul.mubr.f32.gmra.mrb[10].mxu0 %v4387_v32  ;;  %3656 = vmatpush3.bf16.msra.mxu1 %v4470_v37 }
 0x20c   :  { %1153 = vmatprep.mubr.f32.mxu0 %v4391_v34  ;;  %3658 = vmatprep.subr.bf16.mxu1 %v4489_v7 }
 0x20f   :  { %1154 = vmatmul.mubr.f32.gmra.mrb[12].mxu0 %v4406_v46  ;;  %3660 = vmatpush3.bf16.msra.mxu1 %v4489_v7 }
 0x210   :  { %1158 = vmatprep.mubr.f32.mxu0 %v4410_v50  ;;  %3710 = vmatprep.subr.bf16.mxu1 %v4368_v24 }
 0x213   :  { %1159 = vmatmul.mubr.f32.gmra.mrb[14].mxu0 %v4425_v63 }
 0x214   :  { %1163 = vmatprep.mubr.f32.mxu0 %v4429_v2 }
 0x217   :  { %1164 = vmatmul.mubr.f32.gmra.mrb[16].mxu0 %v4444_v14 }
 0x218   :  { %1168 = vmatprep.mubr.f32.mxu0 %v4448_v17 }
 0x21b   :  { %1169 = vmatmul.mubr.f32.gmra.mrb[18].mxu0 %v4463_v29 }
 0x21c   :  { %1173 = vmatprep.mubr.f32.mxu0 %v4467_v31 }
 0x21f   :  { %1174 = vmatmul.mubr.f32.gmra.mrb[20].mxu0 %v4482_v58 }
 0x220   :  { %1178 = vmatprep.mubr.f32.mxu0 %v4486_v61 }
 0x223   :  { %1179 = vmatmul.mubr.f32.gmra.mrb[22].mxu0 %v4495_v12  ;;  %v4529_v12 = vunpack.c.h.bf16 %v105_v42 }
 0x224   :  { %1183 = vmatprep.mubr.f32.mxu0 %v4499_v21  ;;  %v4526_v21 = vunpack.c.l.bf16 %v104_v41  ;;  %v107_v41 = vld [vmem:[%s5077_s1 + $0x68] sm:$0xff] }
 0x225   :  { %5214 = vst [vmem:[#allocation19_spill] sm:$0xff] %v4529_v12 }
 0x226   :  { %5213 = vst [vmem:[#allocation18_spill] sm:$0xff] %v4526_v21 }
 0x227   :  { %1184 = vmatmul.mubr.f32.gmra.mrb[24].mxu0 %v4506_v26  ;;  %v4538_v26 = vunpack.c.h.bf16 %v106_v43 }
 0x228   :  { %1188 = vmatprep.mubr.f32.mxu0 %v4510_v39  ;;  %v4535_v39 = vunpack.c.l.bf16 %v105_v42  ;;  %v108_v42 = vld [vmem:[%s5077_s1 + $0x70] sm:$0xff] }
 0x229   :  { %5216 = vst [vmem:[#allocation21_spill] sm:$0xff] %v4538_v26 }
 0x22a   :  { %5215 = vst [vmem:[#allocation20_spill] sm:$0xff] %v4535_v39 }
 0x22b   :  { %1189 = vmatmul.mubr.f32.gmra.mrb[26].mxu0 %v4517_v55  ;;  %v4547_v55 = vunpack.c.h.bf16 %v107_v41 }
 0x22c   :  { %1193 = vmatprep.mubr.f32.mxu0 %v4520_v11  ;;  %v4544_v11 = vunpack.c.l.bf16 %v106_v43  ;;  %v109_v43 = vld [vmem:[%s5077_s1 + $0x78] sm:$0xff] }
 0x22d   :  { %5218 = vst [vmem:[#allocation23_spill] sm:$0xff] %v4547_v55 }
 0x22e   :  { %5217 = vst [vmem:[#allocation22_spill] sm:$0xff] %v4544_v11 }
 0x22f   :  { %1194 = vmatmul.mubr.f32.gmra.mrb[28].mxu0 %v4526_v21  ;;  %v4556_v21 = vunpack.c.h.bf16 %v108_v42 }
 0x230   :  { %1198 = vmatprep.mubr.f32.mxu0 %v4529_v12  ;;  %v4553_v12 = vunpack.c.l.bf16 %v107_v41  ;;  %v110_v41 = vld [vmem:[%s5077_s1 + $0x80] sm:$0xff] }
 0x231   :  { %5220 = vst [vmem:[#allocation25_spill] sm:$0xff] %v4556_v21 }
 0x232   :  { %5219 = vst [vmem:[#allocation24_spill] sm:$0xff] %v4553_v12 }
 0x233   :  { %1199 = vmatmul.mubr.f32.gmra.mrb[30].mxu0 %v4535_v39  ;;  %v4565_v39 = vunpack.c.h.bf16 %v109_v43 }
 0x234   :  { %1203 = vmatprep.mubr.f32.mxu0 %v4538_v26  ;;  %v4562_v26 = vunpack.c.l.bf16 %v108_v42  ;;  %v111_v42 = vld [vmem:[%s5077_s1 + $0x88] sm:$0xff] }
 0x235   :  { %5222 = vst [vmem:[#allocation27_spill] sm:$0xff] %v4565_v39 }
 0x236   :  { %5221 = vst [vmem:[#allocation26_spill] sm:$0xff] %v4562_v26 }
 0x237   :  { %1204 = vmatmul.mubr.f32.gmra.mrb[32].mxu0 %v4544_v11  ;;  %v4574_v11 = vunpack.c.h.bf16 %v110_v41 }
 0x238   :  { %1208 = vmatprep.mubr.f32.mxu0 %v4547_v55  ;;  %v4571_v55 = vunpack.c.l.bf16 %v109_v43  ;;  %v112_v43 = vld [vmem:[%s5077_s1 + $0x90] sm:$0xff] }
 0x239   :  { %5224 = vst [vmem:[#allocation29_spill] sm:$0xff] %v4574_v11 }
 0x23a   :  { %5223 = vst [vmem:[#allocation28_spill] sm:$0xff] %v4571_v55 }
 0x23b   :  { %1209 = vmatmul.mubr.f32.gmra.mrb[34].mxu0 %v4553_v12  ;;  %v4583_v12 = vunpack.c.h.bf16 %v111_v42 }
 0x23c   :  { %1213 = vmatprep.mubr.f32.mxu0 %v4556_v21  ;;  %v4580_v21 = vunpack.c.l.bf16 %v110_v41  ;;  %v113_v41 = vld [vmem:[%s5077_s1 + $0x98] sm:$0xff] }
 0x23d   :  { %5226 = vst [vmem:[#allocation31_spill] sm:$0xff] %v4583_v12 }
 0x23e   :  { %5225 = vst [vmem:[#allocation30_spill] sm:$0xff] %v4580_v21 }
 0x23f   :  { %1214 = vmatmul.mubr.f32.gmra.mrb[36].mxu0 %v4562_v26  ;;  %v4592_v26 = vunpack.c.h.bf16 %v112_v43 }
 0x240   :  { %1218 = vmatprep.mubr.f32.mxu0 %v4565_v39  ;;  %v4589_v39 = vunpack.c.l.bf16 %v111_v42  ;;  %v114_v42 = vld [vmem:[%s5077_s1 + $0xa0] sm:$0xff] }
 0x241   :  { %5228 = vst [vmem:[#allocation33_spill] sm:$0xff] %v4592_v26 }
 0x242   :  { %5227 = vst [vmem:[#allocation32_spill] sm:$0xff] %v4589_v39 }
 0x243   :  { %1219 = vmatmul.mubr.f32.gmra.mrb[38].mxu0 %v4571_v55  ;;  %v4601_v55 = vunpack.c.h.bf16 %v113_v41 }
 0x244   :  { %1223 = vmatprep.mubr.f32.mxu0 %v4574_v11  ;;  %v4598_v11 = vunpack.c.l.bf16 %v112_v43  ;;  %v115_v43 = vld [vmem:[%s5077_s1 + $0xa8] sm:$0xff] }
 0x245   :  { %5230 = vst [vmem:[#allocation35_spill] sm:$0xff] %v4601_v55 }
 0x246   :  { %5229 = vst [vmem:[#allocation34_spill] sm:$0xff] %v4598_v11 }
 0x247   :  { %1224 = vmatmul.mubr.f32.gmra.mrb[40].mxu0 %v4580_v21  ;;  %v4610_v21 = vunpack.c.h.bf16 %v114_v42 }
 0x248   :  { %1228 = vmatprep.mubr.f32.mxu0 %v4583_v12  ;;  %v4607_v12 = vunpack.c.l.bf16 %v113_v41  ;;  %v116_v41 = vld [vmem:[%s5077_s1 + $0xb0] sm:$0xff] }
 0x249   :  { %5232 = vst [vmem:[#allocation37_spill] sm:$0xff] %v4610_v21 }
 0x24a   :  { %5231 = vst [vmem:[#allocation36_spill] sm:$0xff] %v4607_v12 }
 0x24b   :  { %1229 = vmatmul.mubr.f32.gmra.mrb[42].mxu0 %v4589_v39  ;;  %v4619_v39 = vunpack.c.h.bf16 %v115_v43 }
 0x24c   :  { %1233 = vmatprep.mubr.f32.mxu0 %v4592_v26  ;;  %v4616_v26 = vunpack.c.l.bf16 %v114_v42  ;;  %v117_v42 = vld [vmem:[%s5077_s1 + $0xb8] sm:$0xff] }
 0x24d   :  { %5234 = vst [vmem:[#allocation39_spill] sm:$0xff] %v4619_v39 }
 0x24e   :  { %5233 = vst [vmem:[#allocation38_spill] sm:$0xff] %v4616_v26 }
 0x24f   :  { %1234 = vmatmul.mubr.f32.gmra.mrb[44].mxu0 %v4598_v11  ;;  %v4628_v11 = vunpack.c.h.bf16 %v116_v41 }
 0x250   :  { %1238 = vmatprep.mubr.f32.mxu0 %v4601_v55  ;;  %v4625_v55 = vunpack.c.l.bf16 %v115_v43  ;;  %v118_v43 = vld [vmem:[%s5077_s1 + $0xc0] sm:$0xff] }
 0x251   :  { %5236 = vst [vmem:[#allocation41_spill] sm:$0xff] %v4628_v11 }
 0x252   :  { %5235 = vst [vmem:[#allocation40_spill] sm:$0xff] %v4625_v55 }
 0x253   :  { %1239 = vmatmul.mubr.f32.gmra.mrb[46].mxu0 %v4607_v12  ;;  %v4637_v12 = vunpack.c.h.bf16 %v117_v42 }
 0x254   :  { %1243 = vmatprep.mubr.f32.mxu0 %v4610_v21  ;;  %v4634_v21 = vunpack.c.l.bf16 %v116_v41  ;;  %v119_v41 = vld [vmem:[%s5077_s1 + $0xc8] sm:$0xff] }
 0x255   :  { %5238 = vst [vmem:[#allocation43_spill] sm:$0xff] %v4637_v12 }
 0x256   :  { %5237 = vst [vmem:[#allocation42_spill] sm:$0xff] %v4634_v21 }
 0x257   :  { %1244 = vmatmul.mubr.f32.gmra.mrb[48].mxu0 %v4616_v26  ;;  %v4646_v26 = vunpack.c.h.bf16 %v118_v43 }
 0x258   :  { %1248 = vmatprep.mubr.f32.mxu0 %v4619_v39  ;;  %v4643_v39 = vunpack.c.l.bf16 %v117_v42  ;;  %v120_v42 = vld [vmem:[%s5077_s1 + $0xd0] sm:$0xff] }
 0x259   :  { %5240 = vst [vmem:[#allocation45_spill] sm:$0xff] %v4646_v26 }
 0x25a   :  { %5239 = vst [vmem:[#allocation44_spill] sm:$0xff] %v4643_v39 }
 0x25b   :  { %1249 = vmatmul.mubr.f32.gmra.mrb[50].mxu0 %v4625_v55  ;;  %v4655_v55 = vunpack.c.h.bf16 %v119_v41 }
 0x25c   :  { %1253 = vmatprep.mubr.f32.mxu0 %v4628_v11  ;;  %v4652_v11 = vunpack.c.l.bf16 %v118_v43  ;;  %v121_v43 = vld [vmem:[%s5077_s1 + $0xd8] sm:$0xff] }
 0x25d   :  { %5242 = vst [vmem:[#allocation47_spill] sm:$0xff] %v4655_v55 }
 0x25e   :  { %5241 = vst [vmem:[#allocation46_spill] sm:$0xff] %v4652_v11 }
 0x25f   :  { %1254 = vmatmul.mubr.f32.gmra.mrb[52].mxu0 %v4634_v21  ;;  %v4664_v21 = vunpack.c.h.bf16 %v120_v42 }
 0x260   :  { %1258 = vmatprep.mubr.f32.mxu0 %v4637_v12  ;;  %v4661_v12 = vunpack.c.l.bf16 %v119_v41  ;;  %v122_v41 = vld [vmem:[%s5077_s1 + $0xe0] sm:$0xff] }
 0x261   :  { %5244 = vst [vmem:[#allocation49_spill] sm:$0xff] %v4664_v21 }
 0x262   :  { %5243 = vst [vmem:[#allocation48_spill] sm:$0xff] %v4661_v12 }
 0x263   :  { %1259 = vmatmul.mubr.f32.gmra.mrb[54].mxu0 %v4643_v39  ;;  %v4673_v39 = vunpack.c.h.bf16 %v121_v43 }
 0x264   :  { %1263 = vmatprep.mubr.f32.mxu0 %v4646_v26  ;;  %v4670_v26 = vunpack.c.l.bf16 %v120_v42  ;;  %v123_v42 = vld [vmem:[%s5077_s1 + $0xe8] sm:$0xff] }
 0x265   :  { %5246 = vst [vmem:[#allocation51_spill] sm:$0xff] %v4673_v39 }
 0x266   :  { %5245 = vst [vmem:[#allocation50_spill] sm:$0xff] %v4670_v26 }
 0x267   :  { %1264 = vmatmul.mubr.f32.gmra.mrb[56].mxu0 %v4652_v11  ;;  %v4682_v11 = vunpack.c.h.bf16 %v122_v41 }
 0x268   :  { %1268 = vmatprep.mubr.f32.mxu0 %v4655_v55  ;;  %v4679_v55 = vunpack.c.l.bf16 %v121_v43  ;;  %v124_v43 = vld [vmem:[%s5077_s1 + $0xf0] sm:$0xff] }
 0x269   :  { %5248 = vst [vmem:[#allocation53_spill] sm:$0xff] %v4682_v11 }
 0x26a   :  { %5247 = vst [vmem:[#allocation52_spill] sm:$0xff] %v4679_v55 }
 0x26b   :  { %1269 = vmatmul.mubr.f32.gmra.mrb[58].mxu0 %v4661_v12  ;;  %v4691_v12 = vunpack.c.h.bf16 %v123_v42 }
 0x26c   :  { %1273 = vmatprep.mubr.f32.mxu0 %v4664_v21  ;;  %v4688_v21 = vunpack.c.l.bf16 %v122_v41  ;;  %v125_v41 = vld [vmem:[%s5077_s1 + $0xf8] sm:$0xff] }
 0x26d   :  { %5250 = vst [vmem:[#allocation55_spill] sm:$0xff] %v4691_v12 }
 0x26e   :  { %5249 = vst [vmem:[#allocation54_spill] sm:$0xff] %v4688_v21 }
 0x26f   :  { %1274 = vmatmul.mubr.f32.gmra.mrb[60].mxu0 %v4670_v26  ;;  %v4700_v26 = vunpack.c.h.bf16 %v124_v43 }
 0x270   :  { %1278 = vmatprep.mubr.f32.mxu0 %v4673_v39  ;;  %v4697_v39 = vunpack.c.l.bf16 %v123_v42  ;;  %v4712_v42 = vunpack.c.l.bf16 %v125_v41 }
 0x271   :  { %5252 = vst [vmem:[#allocation57_spill] sm:$0xff] %v4700_v26 }
 0x272   :  { %5251 = vst [vmem:[#allocation56_spill] sm:$0xff] %v4697_v39  ;;  %5255 = vst [vmem:[#allocation60_spill] sm:$0xff] %v4712_v42 }
 0x273   :  { %1279 = vmatmul.mubr.f32.gmra.mrb[62].mxu0 %v4679_v55  ;;  %v4709_v55 = vunpack.c.h.bf16 %v125_v41 }
 0x274   :  { %1283 = vmatprep.mubr.f32.mxu0 %v4682_v11  ;;  %v4706_v11 = vunpack.c.l.bf16 %v124_v43 }
 0x275   :  { %5254 = vst [vmem:[#allocation59_spill] sm:$0xff] %v4709_v55 }
 0x276   :  { %5253 = vst [vmem:[#allocation58_spill] sm:$0xff] %v4706_v11 }
 0x277   :  { %1284 = vmatmul.mubr.f32.gmra.mrb[64].mxu0 %v4688_v21 }
 0x278   :  { %1288 = vmatprep.mubr.f32.mxu0 %v4691_v12 }
 0x27b   :  { %1289 = vmatmul.mubr.f32.gmra.mrb[66].mxu0 %v4697_v39 }
 0x27c   :  { %1293 = vmatprep.mubr.f32.mxu0 %v4700_v26 }
 0x27f   :  { %1294 = vmatmul.mubr.f32.gmra.mrb[68].mxu0 %v4706_v11 }
 0x280   :  { %1298 = vmatprep.mubr.f32.mxu0 %v4709_v55 }
 0x283   :  { %1299 = vmatmul.mubr.f32.gmra.mrb[70].mxu0 %v4712_v42 }
 0x284   :  { %1657 = vmatprep.mubr.f32.mxu0 %v4237_v44 }
 0x2da   :  { %v1145_v12 = vpop.f32.mrb[8].mxu0 }
 0x2db   :  { %v1147_v21 = vpop.f32.mrb[9].mxu0  ;;  %3349 = vmatprep.mubr.f32.mxu1 %v1145_v12 }
 0x2de   :  { %v1150_v39 = vpop.f32.mrb[10].mxu0 }
 0x2df   :  { %3350 = vmatmul.mubr.f32.vlgmr.msra.gmra.mrb[32].mxu1 %v1150_v39  ;;  %v1152_v43 = vpop.f32.mrb[11].mxu0 }
 0x2e0   :  { %3712 = vmatpush3.bf16.msra.mxu1 %v4368_v24 }
 0x2e1   :  { %3714 = vmatprep.subr.bf16.mxu1 %v4376_v27 }
 0x2e2   :  { %v1155_v26 = vpop.f32.mrb[12].mxu0 }
 0x2e3   :  { %v1157_v11 = vpop.f32.mrb[13].mxu0  ;;  %3352 = vmatprep.mubr.f32.mxu1 %v1155_v26 }
 0x2e4   :  { %3716 = vmatpush3.bf16.msra.mxu1 %v4376_v27 }
 0x2e5   :  { %3718 = vmatprep.subr.bf16.mxu1 %v4394_v36 }
 0x2e6   :  { %v1160_v41 = vpop.f32.mrb[14].mxu0 }
 0x2e7   :  { %3353 = vmatmul.mubr.f32.gmra.mrb[34].mxu1 %v1160_v41  ;;  %v1162_v44 = vpop.f32.mrb[15].mxu0 }
 0x2e8   :  { %3720 = vmatpush3.bf16.msra.mxu1 %v4394_v36 }
 0x2e9   :  { %3722 = vmatprep.subr.bf16.mxu1 %v4413_v53 }
 0x2ea   :  { %v1165_v12 = vpop.f32.mrb[16].mxu0 }
 0x2eb   :  { %v1167_v21 = vpop.f32.mrb[17].mxu0  ;;  %3355 = vmatprep.mubr.f32.mxu1 %v1165_v12 }
 0x2ec   :  { %3724 = vmatpush3.bf16.msra.mxu1 %v4413_v53 }
 0x2ed   :  { %3726 = vmatprep.subr.bf16.mxu1 %v4432_v6 }
 0x2ee   :  { %v1170_v39 = vpop.f32.mrb[18].mxu0 }
 0x2ef   :  { %3356 = vmatmul.mubr.f32.gmra.mrb[36].mxu1 %v1170_v39  ;;  %v1172_v26 = vpop.f32.mrb[19].mxu0  ;;  %v5256_v39 = vmov 0.0|0.0  }
 0x2f0   :  { %3728 = vmatpush3.bf16.msra.mxu1 %v4432_v6 }
 0x2f1   :  { %3730 = vmatprep.subr.bf16.mxu1 %v4451_v19 }
 0x2f2   :  { %v1175_v11 = vpop.f32.mrb[20].mxu0 }
 0x2f3   :  { %v1177_v44 = vpop.f32.mrb[21].mxu0  ;;  %3358 = vmatprep.mubr.f32.mxu1 %v1175_v11 }
 0x2f4   :  { %3732 = vmatpush3.bf16.msra.mxu1 %v4451_v19 }
 0x2f5   :  { %3734 = vmatprep.subr.bf16.mxu1 %v4470_v37 }
 0x2f6   :  { %v1180_v43 = vpop.f32.mrb[22].mxu0 }
 0x2f7   :  { %3359 = vmatmul.mubr.f32.gmra.mrb[38].mxu1 %v1180_v43  ;;  %v1182_v41 = vpop.f32.mrb[23].mxu0 }
 0x2f8   :  { %3736 = vmatpush3.bf16.msra.mxu1 %v4470_v37 }
 0x2f9   :  { %3738 = vmatprep.subr.bf16.mxu1 %v4489_v7 }
 0x2fa   :  { %v1185_v12 = vpop.f32.mrb[24].mxu0 }
 0x2fb   :  { %v1187_v21 = vpop.f32.mrb[25].mxu0  ;;  %3361 = vmatprep.mubr.f32.mxu1 %v1185_v12 }
 0x2fc   :  { %3740 = vmatpush3.bf16.msra.mxu1 %v4489_v7 }
 0x2fd   :  { %3741 = vmatprep.subr.bf16.mxu1 %v5256_v39 }
 0x2fe   :  { %v1190_v26 = vpop.f32.mrb[26].mxu0 }
 0x2ff   :  { %3362 = vmatmul.mubr.f32.gmra.mrb[40].mxu1 %v1190_v26  ;;  %v1192_v11 = vpop.f32.mrb[27].mxu0 }
 0x302   :  { %v1195_v44 = vpop.f32.mrb[28].mxu0 }
 0x303   :  { %v1197_v42 = vpop.f32.mrb[29].mxu0  ;;  %3364 = vmatprep.mubr.f32.mxu1 %v1195_v44 }
 0x306   :  { %v1200_v55 = vpop.f32.mrb[30].mxu0 }
 0x307   :  { %3365 = vmatmul.mubr.f32.gmra.mrb[42].mxu1 %v1200_v55  ;;  %v1202_v43 = vpop.f32.mrb[31].mxu0 }
 0x30a   :  { %v1205_v41 = vpop.f32.mrb[32].mxu0 }
 0x30b   :  { %v1207_v61 = vpop.f32.mrb[33].mxu0  ;;  %3367 = vmatprep.mubr.f32.mxu1 %v1205_v41 }
 0x30e   :  { %v1210_v58 = vpop.f32.mrb[34].mxu0 }
 0x30f   :  { %3368 = vmatmul.mubr.f32.gmra.mrb[44].mxu1 %v1210_v58  ;;  %v1212_v21 = vpop.f32.mrb[35].mxu0 }
 0x312   :  { %v1215_v12 = vpop.f32.mrb[36].mxu0 }
 0x313   :  { %v1217_v37 = vpop.f32.mrb[37].mxu0  ;;  %3370 = vmatprep.mubr.f32.mxu1 %v1215_v12 }
 0x316   :  { %v1220_v7 = vpop.f32.mrb[38].mxu0 }
 0x317   :  { %3371 = vmatmul.mubr.f32.gmra.mrb[46].mxu1 %v1220_v7  ;;  %v1222_v31 = vpop.f32.mrb[39].mxu0 }
 0x31a   :  { %v1225_v26 = vpop.f32.mrb[40].mxu0 }
 0x31b   :  { %v1227_v11 = vpop.f32.mrb[41].mxu0  ;;  %3373 = vmatprep.mubr.f32.mxu1 %v1225_v26 }
 0x31e   :  { %v1230_v42 = vpop.f32.mrb[42].mxu0 }
 0x31f   :  { %3374 = vmatmul.mubr.f32.gmra.mrb[48].mxu1 %v1230_v42  ;;  %v1232_v44 = vpop.f32.mrb[43].mxu0 }
 0x322   :  { %v1235_v55 = vpop.f32.mrb[44].mxu0 }
 0x323   :  { %v1237_v43 = vpop.f32.mrb[45].mxu0  ;;  %3376 = vmatprep.mubr.f32.mxu1 %v1235_v55 }
 0x326   :  { %v1240_v61 = vpop.f32.mrb[46].mxu0 }
 0x327   :  { %3377 = vmatmul.mubr.f32.gmra.mrb[50].mxu1 %v1240_v61  ;;  %v1242_v41 = vpop.f32.mrb[47].mxu0 }
 0x32a   :  { %v1245_v58 = vpop.f32.mrb[48].mxu0 }
 0x32b   :  { %v1247_v21 = vpop.f32.mrb[49].mxu0  ;;  %3379 = vmatprep.mubr.f32.mxu1 %v1245_v58 }
 0x32e   :  { %v1250_v37 = vpop.f32.mrb[50].mxu0 }
 0x32f   :  { %3380 = vmatmul.mubr.f32.gmra.mrb[52].mxu1 %v1250_v37  ;;  %v1252_v12 = vpop.f32.mrb[51].mxu0 }
 0x332   :  { %v1255_v7 = vpop.f32.mrb[52].mxu0 }
 0x333   :  { %v1257_v31 = vpop.f32.mrb[53].mxu0  ;;  %3382 = vmatprep.mubr.f32.mxu1 %v1255_v7 }
 0x336   :  { %v1260_v11 = vpop.f32.mrb[54].mxu0 }
 0x337   :  { %3383 = vmatmul.mubr.f32.gmra.mrb[54].mxu1 %v1260_v11  ;;  %v1262_v26 = vpop.f32.mrb[55].mxu0 }
 0x33a   :  { %v1265_v42 = vpop.f32.mrb[56].mxu0 }
 0x33b   :  { %v1267_v44 = vpop.f32.mrb[57].mxu0  ;;  %3385 = vmatprep.mubr.f32.mxu1 %v1265_v42 }
 0x33e   :  { %v1270_v43 = vpop.f32.mrb[58].mxu0 }
 0x33f   :  { %3386 = vmatmul.mubr.f32.gmra.mrb[56].mxu1 %v1270_v43  ;;  %v1272_v55 = vpop.f32.mrb[59].mxu0 }
 0x342   :  { %v1275_v61 = vpop.f32.mrb[60].mxu0 }
 0x343   :  { %v1277_v41 = vpop.f32.mrb[61].mxu0  ;;  %3388 = vmatprep.mubr.f32.mxu1 %v1275_v61 }
 0x346   :  { %v1280_v21 = vpop.f32.mrb[62].mxu0 }
 0x347   :  { %3389 = vmatmul.mubr.f32.gmra.mrb[58].mxu1 %v1280_v21  ;;  %v1282_v58 = vpop.f32.mrb[63].mxu0 }
 0x34a   :  { %v1285_v37 = vpop.f32.mrb[64].mxu0 }
 0x34b   :  { %v1287_v12 = vpop.f32.mrb[65].mxu0  ;;  %3391 = vmatprep.mubr.f32.mxu1 %v1285_v37 }
 0x34e   :  { %v1290_v31 = vpop.f32.mrb[66].mxu0 }
 0x34f   :  { %3392 = vmatmul.mubr.f32.gmra.mrb[60].mxu1 %v1290_v31  ;;  %v1292_v7 = vpop.f32.mrb[67].mxu0 }
 0x352   :  { %v1295_v11 = vpop.f32.mrb[68].mxu0 }
 0x353   :  { %v1297_v26 = vpop.f32.mrb[69].mxu0  ;;  %3394 = vmatprep.mubr.f32.mxu1 %v1295_v11 }
 0x356   :  { %v1300_v44 = vpop.f32.mrb[70].mxu0 }
 0x357   :  { %3395 = vmatmul.mubr.f32.gmra.mrb[62].mxu1 %v1300_v44  ;;  %v1302_v42 = vpop.f32.mrb[71].mxu0 }
 0x3b2   :  { %v3351_v43 = vpop.f32.mrb[32].mxu1 }
 0x3b3   :  { %v1530_v55 = vadd.f32 %v3351_v43, %v4240_v45  ;;  %v1370_v41 = vpop.f32.mrb[33].mxu1 }
 0x3b4   :  { %v1529_v61 = vadd.f32 %v1370_v41, %v4243_v47 }
 0x3b5   :  { %v1562_v21 = vmax.f32 %v1530_v55, 0.0 }
 0x3b6   :  { %v1561_v58 = vmax.f32 %v1529_v61, 0.0 }
 0x3b8   :  { %v3662_v29 = vpack.c.bf16 %v1562_v21, %v1561_v58 }
 0x3ba   :  { %v3354_v12 = vpop.f32.mrb[34].mxu1  ;;  %3663 = vmatpush1.bf16.msra.mxu0 %v3662_v29 }
 0x3bb   :  { %v1532_v37 = vadd.f32 %v3354_v12, %v4246_v49  ;;  %v1380_v31 = vpop.f32.mrb[35].mxu1  ;;  %3664 = vmatprep.subr.bf16.mxu0 %v5256_v39 }
 0x3bc   :  { %v1531_v7 = vadd.f32 %v1380_v31, %v4249_v52 }
 0x3bd   :  { %v1564_v11 = vmax.f32 %v1532_v37, 0.0 }
 0x3be   :  { %v1563_v26 = vmax.f32 %v1531_v7, 0.0 }
 0x3c0   :  { %v3665_v44 = vpack.c.bf16 %v1564_v11, %v1563_v26 }
 0x3c2   :  { %v3357_v42 = vpop.f32.mrb[36].mxu1  ;;  %3666 = vmatpush1.bf16.msra.mxu0 %v3665_v44 }
 0x3c3   :  { %v1534_v43 = vadd.f32 %v3357_v42, %v4253_v54  ;;  %v1390_v41 = vpop.f32.mrb[37].mxu1  ;;  %3667 = vmatprep.subr.bf16.mxu0 %v5256_v39 }
 0x3c4   :  { %v1533_v55 = vadd.f32 %v1390_v41, %v4256_v57 }
 0x3c5   :  { %v1566_v29 = vmax.f32 %v1534_v43, 0.0 }
 0x3c6   :  { %v1565_v61 = vmax.f32 %v1533_v55, 0.0 }
 0x3c8   :  { %v3668_v21 = vpack.c.bf16 %v1566_v29, %v1565_v61 }
 0x3ca   :  { %v3360_v58 = vpop.f32.mrb[38].mxu1  ;;  %3669 = vmatpush1.bf16.msra.mxu0 %v3668_v21 }
 0x3cb   :  { %v1536_v12 = vadd.f32 %v3360_v58, %v4260_v59  ;;  %v1400_v31 = vpop.f32.mrb[39].mxu1  ;;  %3670 = vmatprep.subr.bf16.mxu0 %v5256_v39 }
 0x3cc   :  { %v1535_v37 = vadd.f32 %v1400_v31, %v4263_v62 }
 0x3cd   :  { %v1568_v7 = vmax.f32 %v1536_v12, 0.0 }
 0x3ce   :  { %v1567_v11 = vmax.f32 %v1535_v37, 0.0 }
 0x3d0   :  { %v3671_v26 = vpack.c.bf16 %v1568_v7, %v1567_v11 }
 0x3d2   :  { %v3363_v44 = vpop.f32.mrb[40].mxu1  ;;  %3672 = vmatpush1.bf16.msra.mxu0 %v3671_v26 }
 0x3d3   :  { %v1538_v42 = vadd.f32 %v3363_v44, %v4267_v0  ;;  %v1410_v41 = vpop.f32.mrb[41].mxu1  ;;  %3673 = vmatprep.subr.bf16.mxu0 %v5256_v39 }
 0x3d4   :  { %v1537_v43 = vadd.f32 %v1410_v41, %v4270_v3 }
 0x3d5   :  { %v1570_v55 = vmax.f32 %v1538_v42, 0.0 }
 0x3d6   :  { %v1569_v29 = vmax.f32 %v1537_v43, 0.0 }
 0x3d8   :  { %v3674_v61 = vpack.c.bf16 %v1570_v55, %v1569_v29 }
 0x3da   :  { %v3366_v21 = vpop.f32.mrb[42].mxu1  ;;  %3675 = vmatpush1.bf16.msra.mxu0 %v3674_v61 }
 0x3db   :  { %v1540_v58 = vadd.f32 %v3366_v21, %v4274_v5  ;;  %v1420_v31 = vpop.f32.mrb[43].mxu1  ;;  %3676 = vmatprep.subr.bf16.mxu0 %v5256_v39 }
 0x3dc   :  { %v1539_v12 = vadd.f32 %v1420_v31, %v4277_v8 }
 0x3dd   :  { %v1572_v37 = vmax.f32 %v1540_v58, 0.0 }
 0x3de   :  { %v1571_v7 = vmax.f32 %v1539_v12, 0.0 }
 0x3e0   :  { %v3677_v11 = vpack.c.bf16 %v1572_v37, %v1571_v7 }
 0x3e2   :  { %v3369_v26 = vpop.f32.mrb[44].mxu1  ;;  %3678 = vmatpush1.bf16.msra.mxu0 %v3677_v11 }
 0x3e3   :  { %v1542_v44 = vadd.f32 %v3369_v26, %v4281_v10  ;;  %v1430_v41 = vpop.f32.mrb[45].mxu1  ;;  %3679 = vmatprep.subr.bf16.mxu0 %v5256_v39 }
 0x3e4   :  { %v1541_v42 = vadd.f32 %v1430_v41, %v4284_v13 }
 0x3e5   :  { %v1574_v43 = vmax.f32 %v1542_v44, 0.0 }
 0x3e6   :  { %v1573_v55 = vmax.f32 %v1541_v42, 0.0 }
 0x3e8   :  { %v3680_v29 = vpack.c.bf16 %v1574_v43, %v1573_v55 }
 0x3ea   :  { %v3372_v61 = vpop.f32.mrb[46].mxu1  ;;  %3681 = vmatpush1.bf16.msra.mxu0 %v3680_v29 }
 0x3eb   :  { %v1544_v21 = vadd.f32 %v3372_v61, %v4288_v15  ;;  %v1440_v31 = vpop.f32.mrb[47].mxu1  ;;  %3682 = vmatprep.subr.bf16.mxu0 %v5256_v39 }
 0x3ec   :  { %v1543_v58 = vadd.f32 %v1440_v31, %v4291_v18 }
 0x3ed   :  { %v1576_v12 = vmax.f32 %v1544_v21, 0.0 }
 0x3ee   :  { %v1575_v37 = vmax.f32 %v1543_v58, 0.0 }
 0x3f0   :  { %v3683_v7 = vpack.c.bf16 %v1576_v12, %v1575_v37 }
 0x3f2   :  { %v3375_v11 = vpop.f32.mrb[48].mxu1  ;;  %3684 = vmatpush1.bf16.msra.mxu0 %v3683_v7 }
 0x3f3   :  { %v1546_v26 = vadd.f32 %v3375_v11, %v4295_v20  ;;  %v1450_v41 = vpop.f32.mrb[49].mxu1  ;;  %3685 = vmatprep.subr.bf16.mxu0 %v5256_v39 }
 0x3f4   :  { %v1545_v44 = vadd.f32 %v1450_v41, %v4298_v23 }
 0x3f5   :  { %v1578_v42 = vmax.f32 %v1546_v26, 0.0 }
 0x3f6   :  { %v1577_v43 = vmax.f32 %v1545_v44, 0.0 }
 0x3f8   :  { %v3686_v55 = vpack.c.bf16 %v1578_v42, %v1577_v43 }
 0x3fa   :  { %v3378_v29 = vpop.f32.mrb[50].mxu1  ;;  %3687 = vmatpush1.bf16.msra.mxu0 %v3686_v55 }
 0x3fb   :  { %v1548_v61 = vadd.f32 %v3378_v29, %v4302_v25  ;;  %v1460_v31 = vpop.f32.mrb[51].mxu1  ;;  %3688 = vmatprep.subr.bf16.mxu0 %v5256_v39 }
 0x3fc   :  { %v1547_v21 = vadd.f32 %v1460_v31, %v4305_v28 }
 0x3fd   :  { %v1580_v58 = vmax.f32 %v1548_v61, 0.0 }
 0x3fe   :  { %v1579_v12 = vmax.f32 %v1547_v21, 0.0 }
 0x400   :  { %v3689_v37 = vpack.c.bf16 %v1580_v58, %v1579_v12 }
 0x402   :  { %v3381_v7 = vpop.f32.mrb[52].mxu1  ;;  %3690 = vmatpush1.bf16.msra.mxu0 %v3689_v37 }
 0x403   :  { %v1550_v11 = vadd.f32 %v3381_v7, %v4309_v30  ;;  %v1470_v41 = vpop.f32.mrb[53].mxu1  ;;  %3691 = vmatprep.subr.bf16.mxu0 %v5256_v39 }
 0x404   :  { %v1549_v26 = vadd.f32 %v1470_v41, %v4312_v33 }
 0x405   :  { %v1582_v44 = vmax.f32 %v1550_v11, 0.0 }
 0x406   :  { %v1581_v42 = vmax.f32 %v1549_v26, 0.0 }
 0x408   :  { %v3692_v43 = vpack.c.bf16 %v1582_v44, %v1581_v42 }
 0x40a   :  { %v3384_v55 = vpop.f32.mrb[54].mxu1  ;;  %3693 = vmatpush1.bf16.msra.mxu0 %v3692_v43 }
 0x40b   :  { %v1552_v29 = vadd.f32 %v3384_v55, %v4316_v35  ;;  %v1480_v31 = vpop.f32.mrb[55].mxu1  ;;  %3694 = vmatprep.subr.bf16.mxu0 %v5256_v39 }
 0x40c   :  { %v1551_v61 = vadd.f32 %v1480_v31, %v4319_v38 }
 0x40d   :  { %v1584_v21 = vmax.f32 %v1552_v29, 0.0 }
 0x40e   :  { %v1583_v58 = vmax.f32 %v1551_v61, 0.0 }
 0x410   :  { %v3695_v12 = vpack.c.bf16 %v1584_v21, %v1583_v58 }
 0x412   :  { %v3387_v37 = vpop.f32.mrb[56].mxu1  ;;  %3696 = vmatpush1.bf16.msra.mxu0 %v3695_v12 }
 0x413   :  { %v1554_v7 = vadd.f32 %v3387_v37, %v4323_v40  ;;  %v1490_v41 = vpop.f32.mrb[57].mxu1  ;;  %3697 = vmatprep.subr.bf16.mxu0 %v5256_v39 }
 0x414   :  { %v1553_v11 = vadd.f32 %v1490_v41, %v4326_v48 }
 0x415   :  { %v1586_v26 = vmax.f32 %v1554_v7, 0.0 }
 0x416   :  { %v1585_v44 = vmax.f32 %v1553_v11, 0.0 }
 0x418   :  { %v3698_v42 = vpack.c.bf16 %v1586_v26, %v1585_v44 }
 0x41a   :  { %v3390_v43 = vpop.f32.mrb[58].mxu1  ;;  %3699 = vmatpush1.bf16.msra.mxu0 %v3698_v42 }
 0x41b   :  { %v1556_v55 = vadd.f32 %v3390_v43, %v4330_v51  ;;  %v1500_v31 = vpop.f32.mrb[59].mxu1  ;;  %3700 = vmatprep.subr.bf16.mxu0 %v5256_v39 }
 0x41c   :  { %v1555_v29 = vadd.f32 %v1500_v31, %v4333_v56 }
 0x41d   :  { %v1588_v61 = vmax.f32 %v1556_v55, 0.0 }
 0x41e   :  { %v1587_v21 = vmax.f32 %v1555_v29, 0.0 }
 0x420   :  { %v3701_v58 = vpack.c.bf16 %v1588_v61, %v1587_v21 }
 0x422   :  { %v3393_v12 = vpop.f32.mrb[60].mxu1  ;;  %3702 = vmatpush1.bf16.msra.mxu0 %v3701_v58  ;;  %v5257_v58 = vld [vmem:[#allocation6_spill] sm:$0xff] }
 0x423   :  { %v1558_v37 = vadd.f32 %v3393_v12, %v4337_v60  ;;  %v1510_v41 = vpop.f32.mrb[61].mxu1  ;;  %3703 = vmatprep.subr.bf16.mxu0 %v5256_v39  ;;  %v5258_v12 = vld [vmem:[#allocation7_spill] sm:$0xff] }
 0x424   :  { %v1557_v7 = vadd.f32 %v1510_v41, %v4340_v1  ;;  %v5260_v41 = vld [vmem:[#allocation9_spill] sm:$0xff] }
 0x425   :  { %v1590_v11 = vmax.f32 %v1558_v37, 0.0  ;;  %v5259_v37 = vld [vmem:[#allocation8_spill] sm:$0xff] }
 0x426   :  { %v1589_v26 = vmax.f32 %v1557_v7, 0.0  ;;  %v5261_v7 = vld [vmem:[#allocation10_spill] sm:$0xff] }
 0x428   :  { %v3704_v44 = vpack.c.bf16 %v1590_v11, %v1589_v26  ;;  %v5262_v11 = vld [vmem:[#allocation11_spill] sm:$0xff]  ;;  %v5263_v26 = vld [vmem:[#allocation12_spill] sm:$0xff] }
 0x42a   :  { %v3396_v42 = vpop.f32.mrb[62].mxu1  ;;  %3705 = vmatpush1.bf16.msra.mxu0 %v3704_v44  ;;  %v5264_v44 = vld [vmem:[#allocation13_spill] sm:$0xff] }
 0x42b   :  { %v1560_v43 = vadd.f32 %v3396_v42, %v4344_v4  ;;  %v1520_v31 = vpop.f32.mrb[63].mxu1  ;;  %3706 = vmatprep.subr.bf16.mxu0 %v5256_v39  ;;  %v5265_v42 = vld [vmem:[#allocation14_spill] sm:$0xff] }
 0x42c   :  { %v1559_v55 = vadd.f32 %v1520_v31, %v4347_v9  ;;  %v5267_v31 = vld [vmem:[#allocation16_spill] sm:$0xff] }
 0x42d   :  { %v1592_v29 = vmax.f32 %v1560_v43, 0.0  ;;  %v5266_v43 = vld [vmem:[#allocation15_spill] sm:$0xff] }
 0x42e   :  { %v1591_v61 = vmax.f32 %v1559_v55, 0.0  ;;  %v5268_v55 = vld [vmem:[#allocation17_spill] sm:$0xff] }
 0x430   :  { %v3707_v21 = vpack.c.bf16 %v1592_v29, %v1591_v61  ;;  %v5269_v29 = vld [vmem:[#allocation18_spill] sm:$0xff]  ;;  %v5270_v61 = vld [vmem:[#allocation19_spill] sm:$0xff] }
 0x432   :  { %3708 = vmatpush1.bf16.msra.mxu0 %v3707_v21  ;;  %v5271_v21 = vld [vmem:[#allocation20_spill] sm:$0xff] }
 0x433   :  { %3790 = vmatprep.subr.bf16.mxu0 %v4368_v24 }
 0x435   :  { %1658 = vmatmul.mubr.f32.vlgmr.msra.gmra.mrb[72].mxu0 %v4355_v16 }
 0x436   :  { %1662 = vmatprep.mubr.f32.mxu0 %v4366_v22  ;;  %3792 = vmatpush3.bf16.msra.mxu0 %v4368_v24 }
 0x437   :  { %3794 = vmatprep.subr.bf16.mxu0 %v4376_v27 }
 0x439   :  { %1663 = vmatmul.mubr.f32.gmra.mrb[74].mxu0 %v4387_v32 }
 0x43a   :  { %1667 = vmatprep.mubr.f32.mxu0 %v4391_v34  ;;  %3796 = vmatpush3.bf16.msra.mxu0 %v4376_v27 }
 0x43b   :  { %3798 = vmatprep.subr.bf16.mxu0 %v4394_v36 }
 0x43d   :  { %1668 = vmatmul.mubr.f32.gmra.mrb[76].mxu0 %v4406_v46 }
 0x43e   :  { %1672 = vmatprep.mubr.f32.mxu0 %v4410_v50  ;;  %3800 = vmatpush3.bf16.msra.mxu0 %v4394_v36 }
 0x43f   :  { %3802 = vmatprep.subr.bf16.mxu0 %v4413_v53 }
 0x441   :  { %1673 = vmatmul.mubr.f32.gmra.mrb[78].mxu0 %v4425_v63 }
 0x442   :  { %1677 = vmatprep.mubr.f32.mxu0 %v4429_v2  ;;  %3804 = vmatpush3.bf16.msra.mxu0 %v4413_v53 }
 0x443   :  { %3806 = vmatprep.subr.bf16.mxu0 %v4432_v6 }
 0x445   :  { %1678 = vmatmul.mubr.f32.gmra.mrb[80].mxu0 %v4444_v14 }
 0x446   :  { %1682 = vmatprep.mubr.f32.mxu0 %v4448_v17  ;;  %3808 = vmatpush3.bf16.msra.mxu0 %v4432_v6 }
 0x447   :  { %3810 = vmatprep.subr.bf16.mxu0 %v4451_v19 }
 0x449   :  { %1683 = vmatmul.mubr.f32.gmra.mrb[82].mxu0 %v5257_v58 }
 0x44a   :  { %1687 = vmatprep.mubr.f32.mxu0 %v5258_v12  ;;  %3812 = vmatpush3.bf16.msra.mxu0 %v4451_v19 }
 0x44b   :  { %3814 = vmatprep.subr.bf16.mxu0 %v5259_v37 }
 0x44d   :  { %1688 = vmatmul.mubr.f32.gmra.mrb[84].mxu0 %v5260_v41 }
 0x44e   :  { %1692 = vmatprep.mubr.f32.mxu0 %v5261_v7  ;;  %3816 = vmatpush3.bf16.msra.mxu0 %v5259_v37  ;;  %v5272_v7 = vld [vmem:[#allocation21_spill] sm:$0xff] }
 0x44f   :  { %3818 = vmatprep.subr.bf16.mxu0 %v5262_v11 }
 0x451   :  { %1693 = vmatmul.mubr.f32.gmra.mrb[86].mxu0 %v5263_v26  ;;  %v5273_v26 = vld [vmem:[#allocation22_spill] sm:$0xff] }
 0x452   :  { %1697 = vmatprep.mubr.f32.mxu0 %v5264_v44  ;;  %3820 = vmatpush3.bf16.msra.mxu0 %v5262_v11  ;;  %v5274_v44 = vld [vmem:[#allocation23_spill] sm:$0xff]  ;;  %v5275_v11 = vld [vmem:[#allocation24_spill] sm:$0xff] }
 0x455   :  { %1698 = vmatmul.mubr.f32.gmra.mrb[88].mxu0 %v5265_v42  ;;  %v5276_v42 = vld [vmem:[#allocation25_spill] sm:$0xff] }
 0x456   :  { %1702 = vmatprep.mubr.f32.mxu0 %v5266_v43  ;;  %v5277_v43 = vld [vmem:[#allocation26_spill] sm:$0xff] }
 0x459   :  { %1703 = vmatmul.mubr.f32.gmra.mrb[90].mxu0 %v5267_v31  ;;  %v5278_v31 = vld [vmem:[#allocation27_spill] sm:$0xff] }
 0x45a   :  { %1707 = vmatprep.mubr.f32.mxu0 %v5268_v55  ;;  %v5279_v55 = vld [vmem:[#allocation28_spill] sm:$0xff] }
 0x45d   :  { %1708 = vmatmul.mubr.f32.gmra.mrb[92].mxu0 %v5269_v29  ;;  %v5280_v29 = vld [vmem:[#allocation29_spill] sm:$0xff] }
 0x45e   :  { %1712 = vmatprep.mubr.f32.mxu0 %v5270_v61  ;;  %v5281_v61 = vld [vmem:[#allocation30_spill] sm:$0xff] }
 0x461   :  { %1713 = vmatmul.mubr.f32.gmra.mrb[94].mxu0 %v5271_v21  ;;  %v5282_v21 = vld [vmem:[#allocation31_spill] sm:$0xff] }
 0x462   :  { %1717 = vmatprep.mubr.f32.mxu0 %v5272_v7  ;;  %v5283_v7 = vld [vmem:[#allocation32_spill] sm:$0xff] }
 0x465   :  { %1718 = vmatmul.mubr.f32.gmra.mrb[96].mxu0 %v5273_v26  ;;  %v5284_v26 = vld [vmem:[#allocation33_spill] sm:$0xff] }
 0x466   :  { %1722 = vmatprep.mubr.f32.mxu0 %v5274_v44  ;;  %v5285_v44 = vld [vmem:[#allocation34_spill] sm:$0xff] }
 0x469   :  { %1723 = vmatmul.mubr.f32.gmra.mrb[98].mxu0 %v5275_v11  ;;  %v5286_v11 = vld [vmem:[#allocation35_spill] sm:$0xff] }
 0x46a   :  { %1727 = vmatprep.mubr.f32.mxu0 %v5276_v42  ;;  %v5287_v42 = vld [vmem:[#allocation36_spill] sm:$0xff] }
 0x46d   :  { %1728 = vmatmul.mubr.f32.gmra.mrb[100].mxu0 %v5277_v43  ;;  %v5288_v43 = vld [vmem:[#allocation37_spill] sm:$0xff] }
 0x46e   :  { %1732 = vmatprep.mubr.f32.mxu0 %v5278_v31  ;;  %v5289_v31 = vld [vmem:[#allocation38_spill] sm:$0xff] }
 0x471   :  { %1733 = vmatmul.mubr.f32.gmra.mrb[102].mxu0 %v5279_v55  ;;  %v5290_v55 = vld [vmem:[#allocation39_spill] sm:$0xff] }
 0x472   :  { %1737 = vmatprep.mubr.f32.mxu0 %v5280_v29  ;;  %v5291_v29 = vld [vmem:[#allocation40_spill] sm:$0xff] }
 0x475   :  { %1738 = vmatmul.mubr.f32.gmra.mrb[104].mxu0 %v5281_v61  ;;  %v5292_v61 = vld [vmem:[#allocation41_spill] sm:$0xff] }
 0x476   :  { %1742 = vmatprep.mubr.f32.mxu0 %v5282_v21  ;;  %v5293_v21 = vld [vmem:[#allocation42_spill] sm:$0xff] }
 0x479   :  { %1743 = vmatmul.mubr.f32.gmra.mrb[106].mxu0 %v5283_v7  ;;  %v5294_v7 = vld [vmem:[#allocation43_spill] sm:$0xff] }
 0x47a   :  { %1747 = vmatprep.mubr.f32.mxu0 %v5284_v26  ;;  %v5295_v26 = vld [vmem:[#allocation44_spill] sm:$0xff] }
 0x47d   :  { %1748 = vmatmul.mubr.f32.gmra.mrb[108].mxu0 %v5285_v44  ;;  %v5296_v44 = vld [vmem:[#allocation45_spill] sm:$0xff] }
 0x47e   :  { %1752 = vmatprep.mubr.f32.mxu0 %v5286_v11  ;;  %v5297_v11 = vld [vmem:[#allocation46_spill] sm:$0xff] }
 0x481   :  { %1753 = vmatmul.mubr.f32.gmra.mrb[110].mxu0 %v5287_v42  ;;  %v5298_v42 = vld [vmem:[#allocation47_spill] sm:$0xff] }
 0x482   :  { %1757 = vmatprep.mubr.f32.mxu0 %v5288_v43  ;;  %v5299_v43 = vld [vmem:[#allocation48_spill] sm:$0xff] }
 0x485   :  { %1758 = vmatmul.mubr.f32.gmra.mrb[112].mxu0 %v5289_v31  ;;  %v5300_v31 = vld [vmem:[#allocation49_spill] sm:$0xff] }
 0x486   :  { %1762 = vmatprep.mubr.f32.mxu0 %v5290_v55  ;;  %v5301_v55 = vld [vmem:[#allocation50_spill] sm:$0xff] }
 0x489   :  { %1763 = vmatmul.mubr.f32.gmra.mrb[114].mxu0 %v5291_v29  ;;  %v5302_v29 = vld [vmem:[#allocation51_spill] sm:$0xff] }
 0x48a   :  { %1767 = vmatprep.mubr.f32.mxu0 %v5292_v61  ;;  %v5303_v61 = vld [vmem:[#allocation52_spill] sm:$0xff] }
 0x48d   :  { %1768 = vmatmul.mubr.f32.gmra.mrb[116].mxu0 %v5293_v21  ;;  %v5304_v21 = vld [vmem:[#allocation53_spill] sm:$0xff] }
 0x48e   :  { %1772 = vmatprep.mubr.f32.mxu0 %v5294_v7  ;;  %v5305_v7 = vld [vmem:[#allocation54_spill] sm:$0xff] }
 0x491   :  { %1773 = vmatmul.mubr.f32.gmra.mrb[118].mxu0 %v5295_v26  ;;  %v5306_v26 = vld [vmem:[#allocation55_spill] sm:$0xff] }
 0x492   :  { %1777 = vmatprep.mubr.f32.mxu0 %v5296_v44  ;;  %v5307_v44 = vld [vmem:[#allocation56_spill] sm:$0xff] }
 0x495   :  { %1778 = vmatmul.mubr.f32.gmra.mrb[120].mxu0 %v5297_v11  ;;  %v5308_v11 = vld [vmem:[#allocation57_spill] sm:$0xff] }
 0x496   :  { %1782 = vmatprep.mubr.f32.mxu0 %v5298_v42  ;;  %v5309_v42 = vld [vmem:[#allocation58_spill] sm:$0xff] }
 0x499   :  { %1783 = vmatmul.mubr.f32.gmra.mrb[122].mxu0 %v5299_v43  ;;  %v5310_v43 = vld [vmem:[#allocation59_spill] sm:$0xff] }
 0x49a   :  { %1787 = vmatprep.mubr.f32.mxu0 %v5300_v31  ;;  %v5311_v31 = vld [vmem:[#allocation60_spill] sm:$0xff] }
 0x49d   :  { %1788 = vmatmul.mubr.f32.gmra.mrb[124].mxu0 %v5301_v55 }
 0x49e   :  { %1792 = vmatprep.mubr.f32.mxu0 %v5302_v29 }
 0x4a1   :  { %1793 = vmatmul.mubr.f32.gmra.mrb[126].mxu0 %v5303_v61 }
 0x4a2   :  { %1797 = vmatprep.mubr.f32.mxu0 %v5304_v21 }
 0x4a5   :  { %1798 = vmatmul.mubr.f32.gmra.mrb[128].mxu0 %v5305_v7 }
 0x4a6   :  { %1802 = vmatprep.mubr.f32.mxu0 %v5306_v26 }
 0x4a9   :  { %1803 = vmatmul.mubr.f32.gmra.mrb[130].mxu0 %v5307_v44 }
 0x4aa   :  { %1807 = vmatprep.mubr.f32.mxu0 %v5308_v11 }
 0x4ad   :  { %1808 = vmatmul.mubr.f32.gmra.mrb[132].mxu0 %v5309_v42 }
 0x4ae   :  { %1812 = vmatprep.mubr.f32.mxu0 %v5310_v43 }
 0x4b1   :  { %1813 = vmatmul.mubr.f32.gmra.mrb[134].mxu0 %v5311_v31 }
 0x508   :  { %v1659_v55 = vpop.f32.mrb[72].mxu0 }
 0x509   :  { %v1661_v29 = vpop.f32.mrb[73].mxu0  ;;  %3429 = vmatprep.mubr.f32.mxu1 %v1659_v55 }
 0x50c   :  { %v1664_v61 = vpop.f32.mrb[74].mxu0 }
 0x50d   :  { %3430 = vmatmul.mubr.f32.vlgmr.msra.gmra.mrb[64].mxu1 %v1664_v61  ;;  %v1666_v21 = vpop.f32.mrb[75].mxu0 }
 0x510   :  { %v1669_v41 = vpop.f32.mrb[76].mxu0 }
 0x511   :  { %v1671_v7 = vpop.f32.mrb[77].mxu0  ;;  %3432 = vmatprep.mubr.f32.mxu1 %v1669_v41 }
 0x514   :  { %v1674_v26 = vpop.f32.mrb[78].mxu0 }
 0x515   :  { %3433 = vmatmul.mubr.f32.gmra.mrb[66].mxu1 %v1674_v26  ;;  %v1676_v44 = vpop.f32.mrb[79].mxu0 }
 0x518   :  { %v1679_v37 = vpop.f32.mrb[80].mxu0 }
 0x519   :  { %v1681_v11 = vpop.f32.mrb[81].mxu0  ;;  %3435 = vmatprep.mubr.f32.mxu1 %v1679_v37 }
 0x51c   :  { %v1684_v42 = vpop.f32.mrb[82].mxu0 }
 0x51d   :  { %3436 = vmatmul.mubr.f32.gmra.mrb[68].mxu1 %v1684_v42  ;;  %v1686_v43 = vpop.f32.mrb[83].mxu0 }
 0x520   :  { %v1689_v12 = vpop.f32.mrb[84].mxu0 }
 0x521   :  { %v1691_v31 = vpop.f32.mrb[85].mxu0  ;;  %3438 = vmatprep.mubr.f32.mxu1 %v1689_v12 }
 0x524   :  { %v1694_v29 = vpop.f32.mrb[86].mxu0 }
 0x525   :  { %3439 = vmatmul.mubr.f32.gmra.mrb[70].mxu1 %v1694_v29  ;;  %v1696_v55 = vpop.f32.mrb[87].mxu0 }
 0x528   :  { %v1699_v61 = vpop.f32.mrb[88].mxu0 }
 0x529   :  { %v1701_v21 = vpop.f32.mrb[89].mxu0  ;;  %3441 = vmatprep.mubr.f32.mxu1 %v1699_v61 }
 0x52c   :  { %v1704_v7 = vpop.f32.mrb[90].mxu0 }
 0x52d   :  { %3442 = vmatmul.mubr.f32.gmra.mrb[72].mxu1 %v1704_v7  ;;  %v1706_v41 = vpop.f32.mrb[91].mxu0 }
 0x530   :  { %v1709_v26 = vpop.f32.mrb[92].mxu0 }
 0x531   :  { %v1711_v44 = vpop.f32.mrb[93].mxu0  ;;  %3444 = vmatprep.mubr.f32.mxu1 %v1709_v26 }
 0x534   :  { %v1714_v11 = vpop.f32.mrb[94].mxu0 }
 0x535   :  { %3445 = vmatmul.mubr.f32.gmra.mrb[74].mxu1 %v1714_v11  ;;  %v1716_v37 = vpop.f32.mrb[95].mxu0 }
 0x538   :  { %v1719_v42 = vpop.f32.mrb[96].mxu0 }
 0x539   :  { %v1721_v43 = vpop.f32.mrb[97].mxu0  ;;  %3447 = vmatprep.mubr.f32.mxu1 %v1719_v42 }
 0x53c   :  { %v1724_v31 = vpop.f32.mrb[98].mxu0 }
 0x53d   :  { %3448 = vmatmul.mubr.f32.gmra.mrb[76].mxu1 %v1724_v31  ;;  %v1726_v12 = vpop.f32.mrb[99].mxu0 }
 0x540   :  { %v1729_v29 = vpop.f32.mrb[100].mxu0 }
 0x541   :  { %v1731_v55 = vpop.f32.mrb[101].mxu0  ;;  %3450 = vmatprep.mubr.f32.mxu1 %v1729_v29 }
 0x544   :  { %v1734_v21 = vpop.f32.mrb[102].mxu0 }
 0x545   :  { %3451 = vmatmul.mubr.f32.gmra.mrb[78].mxu1 %v1734_v21  ;;  %v1736_v61 = vpop.f32.mrb[103].mxu0 }
 0x548   :  { %v1739_v7 = vpop.f32.mrb[104].mxu0 }
 0x549   :  { %v1741_v41 = vpop.f32.mrb[105].mxu0  ;;  %3453 = vmatprep.mubr.f32.mxu1 %v1739_v7 }
 0x54c   :  { %v1744_v44 = vpop.f32.mrb[106].mxu0 }
 0x54d   :  { %3454 = vmatmul.mubr.f32.gmra.mrb[80].mxu1 %v1744_v44  ;;  %v1746_v26 = vpop.f32.mrb[107].mxu0 }
 0x550   :  { %v1749_v11 = vpop.f32.mrb[108].mxu0 }
 0x551   :  { %v1751_v37 = vpop.f32.mrb[109].mxu0  ;;  %3456 = vmatprep.mubr.f32.mxu1 %v1749_v11 }
 0x554   :  { %v1754_v43 = vpop.f32.mrb[110].mxu0 }
 0x555   :  { %3457 = vmatmul.mubr.f32.gmra.mrb[82].mxu1 %v1754_v43  ;;  %v1756_v42 = vpop.f32.mrb[111].mxu0 }
 0x558   :  { %v1759_v31 = vpop.f32.mrb[112].mxu0 }
 0x559   :  { %v1761_v12 = vpop.f32.mrb[113].mxu0  ;;  %3459 = vmatprep.mubr.f32.mxu1 %v1759_v31 }
 0x55c   :  { %v1764_v55 = vpop.f32.mrb[114].mxu0 }
 0x55d   :  { %3460 = vmatmul.mubr.f32.gmra.mrb[84].mxu1 %v1764_v55  ;;  %v1766_v29 = vpop.f32.mrb[115].mxu0 }
 0x560   :  { %v1769_v21 = vpop.f32.mrb[116].mxu0 }
 0x561   :  { %v1771_v61 = vpop.f32.mrb[117].mxu0  ;;  %3462 = vmatprep.mubr.f32.mxu1 %v1769_v21 }
 0x564   :  { %v1774_v41 = vpop.f32.mrb[118].mxu0 }
 0x565   :  { %3463 = vmatmul.mubr.f32.gmra.mrb[86].mxu1 %v1774_v41  ;;  %v1776_v7 = vpop.f32.mrb[119].mxu0 }
 0x568   :  { %v1779_v44 = vpop.f32.mrb[120].mxu0 }
 0x569   :  { %v1781_v26 = vpop.f32.mrb[121].mxu0  ;;  %3465 = vmatprep.mubr.f32.mxu1 %v1779_v44 }
 0x56c   :  { %v1784_v37 = vpop.f32.mrb[122].mxu0 }
 0x56d   :  { %3466 = vmatmul.mubr.f32.gmra.mrb[88].mxu1 %v1784_v37  ;;  %v1786_v11 = vpop.f32.mrb[123].mxu0  ;;  %v5312_v37 = vld [vmem:[#allocation5_spill] sm:$0xff] }
 0x570   :  { %v1789_v43 = vpop.f32.mrb[124].mxu0 }
 0x571   :  { %v1791_v42 = vpop.f32.mrb[125].mxu0  ;;  %3468 = vmatprep.mubr.f32.mxu1 %v1789_v43 }
 0x574   :  { %v1794_v12 = vpop.f32.mrb[126].mxu0 }
 0x575   :  { %3469 = vmatmul.mubr.f32.gmra.mrb[90].mxu1 %v1794_v12  ;;  %v1796_v31 = vpop.f32.mrb[127].mxu0 }
 0x578   :  { %v1799_v55 = vpop.f32.mrb[128].mxu0 }
 0x579   :  { %v1801_v29 = vpop.f32.mrb[129].mxu0  ;;  %3471 = vmatprep.mubr.f32.mxu1 %v1799_v55 }
 0x57c   :  { %v1804_v61 = vpop.f32.mrb[130].mxu0 }
 0x57d   :  { %3472 = vmatmul.mubr.f32.gmra.mrb[92].mxu1 %v1804_v61  ;;  %v1806_v21 = vpop.f32.mrb[131].mxu0 }
 0x580   :  { %v1809_v41 = vpop.f32.mrb[132].mxu0 }
 0x581   :  { %v1811_v7 = vpop.f32.mrb[133].mxu0  ;;  %3474 = vmatprep.mubr.f32.mxu1 %v1809_v41 }
 0x584   :  { %v1814_v26 = vpop.f32.mrb[134].mxu0 }
 0x585   :  { %3475 = vmatmul.mubr.f32.gmra.mrb[94].mxu1 %v1814_v26  ;;  %v1816_v44 = vpop.f32.mrb[135].mxu0 }
 0x586   :  { %2171 = vmatprep.mubr.f32.mxu1 %v5312_v37 }
 0x5e0   :  { %v3431_v11 = vpop.f32.mrb[64].mxu1 }
 0x5e1   :  { %v2044_v43 = vadd.f32 %v3431_v11, %v4240_v45  ;;  %v1884_v42 = vpop.f32.mrb[65].mxu1 }
 0x5e2   :  { %v2043_v12 = vadd.f32 %v1884_v42, %v4243_v47 }
 0x5e3   :  { %v2076_v31 = vmax.f32 %v2044_v43, 0.0 }
 0x5e4   :  { %v2075_v29 = vmax.f32 %v2043_v12, 0.0 }
 0x5e6   :  { %v3742_v55 = vpack.c.bf16 %v2076_v31, %v2075_v29 }
 0x5e8   :  { %v3434_v58 = vpop.f32.mrb[66].mxu1  ;;  %3743 = vmatpush1.bf16.msra.mxu1 %v3742_v55 }
 0x5e9   :  { %v2046_v61 = vadd.f32 %v3434_v58, %v4246_v49  ;;  %v1894_v21 = vpop.f32.mrb[67].mxu1  ;;  %3744 = vmatprep.subr.bf16.mxu1 %v5256_v39 }
 0x5ea   :  { %v2045_v41 = vadd.f32 %v1894_v21, %v4249_v52 }
 0x5eb   :  { %v2078_v7 = vmax.f32 %v2046_v61, 0.0 }
 0x5ec   :  { %v2077_v26 = vmax.f32 %v2045_v41, 0.0 }
 0x5ee   :  { %v3745_v44 = vpack.c.bf16 %v2078_v7, %v2077_v26 }
 0x5f0   :  { %v3437_v37 = vpop.f32.mrb[68].mxu1  ;;  %3746 = vmatpush1.bf16.msra.mxu1 %v3745_v44 }
 0x5f1   :  { %v2048_v11 = vadd.f32 %v3437_v37, %v4253_v54  ;;  %v1904_v42 = vpop.f32.mrb[69].mxu1  ;;  %3747 = vmatprep.subr.bf16.mxu1 %v5256_v39 }
 0x5f2   :  { %v2047_v43 = vadd.f32 %v1904_v42, %v4256_v57 }
 0x5f3   :  { %v2080_v12 = vmax.f32 %v2048_v11, 0.0 }
 0x5f4   :  { %v2079_v31 = vmax.f32 %v2047_v43, 0.0 }
 0x5f6   :  { %v3748_v58 = vpack.c.bf16 %v2080_v12, %v2079_v31 }
 0x5f8   :  { %v3440_v29 = vpop.f32.mrb[70].mxu1  ;;  %3749 = vmatpush1.bf16.msra.mxu1 %v3748_v58 }
 0x5f9   :  { %v2050_v55 = vadd.f32 %v3440_v29, %v4260_v59  ;;  %v1914_v21 = vpop.f32.mrb[71].mxu1  ;;  %3750 = vmatprep.subr.bf16.mxu1 %v5256_v39 }
 0x5fa   :  { %v2049_v61 = vadd.f32 %v1914_v21, %v4263_v62 }
 0x5fb   :  { %v2082_v41 = vmax.f32 %v2050_v55, 0.0 }
 0x5fc   :  { %v2081_v7 = vmax.f32 %v2049_v61, 0.0 }
 0x5fe   :  { %v3751_v26 = vpack.c.bf16 %v2082_v41, %v2081_v7 }
 0x600   :  { %v3443_v44 = vpop.f32.mrb[72].mxu1  ;;  %3752 = vmatpush1.bf16.msra.mxu1 %v3751_v26 }
 0x601   :  { %v2052_v37 = vadd.f32 %v3443_v44, %v4267_v0  ;;  %v1924_v42 = vpop.f32.mrb[73].mxu1  ;;  %3753 = vmatprep.subr.bf16.mxu1 %v5256_v39 }
 0x602   :  { %v2051_v11 = vadd.f32 %v1924_v42, %v4270_v3 }
 0x603   :  { %v2084_v43 = vmax.f32 %v2052_v37, 0.0 }
 0x604   :  { %v2083_v12 = vmax.f32 %v2051_v11, 0.0 }
 0x606   :  { %v3754_v31 = vpack.c.bf16 %v2084_v43, %v2083_v12 }
 0x608   :  { %v3446_v58 = vpop.f32.mrb[74].mxu1  ;;  %3755 = vmatpush1.bf16.msra.mxu1 %v3754_v31 }
 0x609   :  { %v2054_v29 = vadd.f32 %v3446_v58, %v4274_v5  ;;  %v1934_v21 = vpop.f32.mrb[75].mxu1  ;;  %3756 = vmatprep.subr.bf16.mxu1 %v5256_v39 }
 0x60a   :  { %v2053_v55 = vadd.f32 %v1934_v21, %v4277_v8 }
 0x60b   :  { %v2086_v61 = vmax.f32 %v2054_v29, 0.0 }
 0x60c   :  { %v2085_v41 = vmax.f32 %v2053_v55, 0.0 }
 0x60e   :  { %v3757_v7 = vpack.c.bf16 %v2086_v61, %v2085_v41 }
 0x610   :  { %v3449_v26 = vpop.f32.mrb[76].mxu1  ;;  %3758 = vmatpush1.bf16.msra.mxu1 %v3757_v7 }
 0x611   :  { %v2056_v44 = vadd.f32 %v3449_v26, %v4281_v10  ;;  %v1944_v42 = vpop.f32.mrb[77].mxu1  ;;  %3759 = vmatprep.subr.bf16.mxu1 %v5256_v39 }
 0x612   :  { %v2055_v37 = vadd.f32 %v1944_v42, %v4284_v13 }
 0x613   :  { %v2088_v11 = vmax.f32 %v2056_v44, 0.0 }
 0x614   :  { %v2087_v43 = vmax.f32 %v2055_v37, 0.0 }
 0x616   :  { %v3760_v12 = vpack.c.bf16 %v2088_v11, %v2087_v43 }
 0x618   :  { %v3452_v31 = vpop.f32.mrb[78].mxu1  ;;  %3761 = vmatpush1.bf16.msra.mxu1 %v3760_v12 }
 0x619   :  { %v2058_v58 = vadd.f32 %v3452_v31, %v4288_v15  ;;  %v1954_v21 = vpop.f32.mrb[79].mxu1  ;;  %3762 = vmatprep.subr.bf16.mxu1 %v5256_v39 }
 0x61a   :  { %v2057_v29 = vadd.f32 %v1954_v21, %v4291_v18 }
 0x61b   :  { %v2090_v55 = vmax.f32 %v2058_v58, 0.0 }
 0x61c   :  { %v2089_v61 = vmax.f32 %v2057_v29, 0.0 }
 0x61e   :  { %v3763_v41 = vpack.c.bf16 %v2090_v55, %v2089_v61 }
 0x620   :  { %v3455_v7 = vpop.f32.mrb[80].mxu1  ;;  %3764 = vmatpush1.bf16.msra.mxu1 %v3763_v41 }
 0x621   :  { %v2060_v26 = vadd.f32 %v3455_v7, %v4295_v20  ;;  %v1964_v42 = vpop.f32.mrb[81].mxu1  ;;  %3765 = vmatprep.subr.bf16.mxu1 %v5256_v39 }
 0x622   :  { %v2059_v44 = vadd.f32 %v1964_v42, %v4298_v23 }
 0x623   :  { %v2092_v37 = vmax.f32 %v2060_v26, 0.0 }
 0x624   :  { %v2091_v11 = vmax.f32 %v2059_v44, 0.0 }
 0x626   :  { %v3766_v43 = vpack.c.bf16 %v2092_v37, %v2091_v11 }
 0x628   :  { %v3458_v12 = vpop.f32.mrb[82].mxu1  ;;  %3767 = vmatpush1.bf16.msra.mxu1 %v3766_v43 }
 0x629   :  { %v2062_v31 = vadd.f32 %v3458_v12, %v4302_v25  ;;  %v1974_v21 = vpop.f32.mrb[83].mxu1  ;;  %3768 = vmatprep.subr.bf16.mxu1 %v5256_v39 }
 0x62a   :  { %v2061_v58 = vadd.f32 %v1974_v21, %v4305_v28 }
 0x62b   :  { %v2094_v29 = vmax.f32 %v2062_v31, 0.0 }
 0x62c   :  { %v2093_v55 = vmax.f32 %v2061_v58, 0.0 }
 0x62e   :  { %v3769_v61 = vpack.c.bf16 %v2094_v29, %v2093_v55 }
 0x630   :  { %v3461_v41 = vpop.f32.mrb[84].mxu1  ;;  %3770 = vmatpush1.bf16.msra.mxu1 %v3769_v61 }
 0x631   :  { %v2064_v7 = vadd.f32 %v3461_v41, %v4309_v30  ;;  %v1984_v42 = vpop.f32.mrb[85].mxu1  ;;  %3771 = vmatprep.subr.bf16.mxu1 %v5256_v39 }
 0x632   :  { %v2063_v26 = vadd.f32 %v1984_v42, %v4312_v33 }
 0x633   :  { %v2096_v44 = vmax.f32 %v2064_v7, 0.0 }
 0x634   :  { %v2095_v37 = vmax.f32 %v2063_v26, 0.0 }
 0x636   :  { %v3772_v11 = vpack.c.bf16 %v2096_v44, %v2095_v37 }
 0x638   :  { %v3464_v43 = vpop.f32.mrb[86].mxu1  ;;  %3773 = vmatpush1.bf16.msra.mxu1 %v3772_v11 }
 0x639   :  { %v2066_v12 = vadd.f32 %v3464_v43, %v4316_v35  ;;  %v1994_v21 = vpop.f32.mrb[87].mxu1  ;;  %3774 = vmatprep.subr.bf16.mxu1 %v5256_v39 }
 0x63a   :  { %v2065_v31 = vadd.f32 %v1994_v21, %v4319_v38 }
 0x63b   :  { %v2098_v58 = vmax.f32 %v2066_v12, 0.0 }
 0x63c   :  { %v2097_v29 = vmax.f32 %v2065_v31, 0.0 }
 0x63e   :  { %v3775_v55 = vpack.c.bf16 %v2098_v58, %v2097_v29 }
 0x640   :  { %v3467_v61 = vpop.f32.mrb[88].mxu1  ;;  %3776 = vmatpush1.bf16.msra.mxu1 %v3775_v55 }
 0x641   :  { %v2068_v41 = vadd.f32 %v3467_v61, %v4323_v40  ;;  %v2004_v42 = vpop.f32.mrb[89].mxu1  ;;  %3777 = vmatprep.subr.bf16.mxu1 %v5256_v39 }
 0x642   :  { %v2067_v7 = vadd.f32 %v2004_v42, %v4326_v48 }
 0x643   :  { %v2100_v26 = vmax.f32 %v2068_v41, 0.0 }
 0x644   :  { %v2099_v44 = vmax.f32 %v2067_v7, 0.0 }
 0x646   :  { %v3778_v37 = vpack.c.bf16 %v2100_v26, %v2099_v44 }
 0x648   :  { %v3470_v11 = vpop.f32.mrb[90].mxu1  ;;  %3779 = vmatpush1.bf16.msra.mxu1 %v3778_v37 }
 0x649   :  { %v2070_v43 = vadd.f32 %v3470_v11, %v4330_v51  ;;  %v2014_v21 = vpop.f32.mrb[91].mxu1  ;;  %3780 = vmatprep.subr.bf16.mxu1 %v5256_v39 }
 0x64a   :  { %v2069_v12 = vadd.f32 %v2014_v21, %v4333_v56 }
 0x64b   :  { %v2102_v31 = vmax.f32 %v2070_v43, 0.0 }
 0x64c   :  { %v2101_v58 = vmax.f32 %v2069_v12, 0.0 }
 0x64e   :  { %v3781_v29 = vpack.c.bf16 %v2102_v31, %v2101_v58 }
 0x650   :  { %v3473_v55 = vpop.f32.mrb[92].mxu1  ;;  %3782 = vmatpush1.bf16.msra.mxu1 %v3781_v29  ;;  %v5330_v29 = vld [vmem:[#allocation23_spill] sm:$0xff] }
 0x651   :  { %v2072_v61 = vadd.f32 %v3473_v55, %v4337_v60  ;;  %v2024_v42 = vpop.f32.mrb[93].mxu1  ;;  %3783 = vmatprep.subr.bf16.mxu1 %v5256_v39  ;;  %v5331_v55 = vld [vmem:[#allocation24_spill] sm:$0xff] }
 0x652   :  { %v2071_v41 = vadd.f32 %v2024_v42, %v4340_v1  ;;  %v5333_v42 = vld [vmem:[#allocation26_spill] sm:$0xff] }
 0x653   :  { %v2104_v7 = vmax.f32 %v2072_v61, 0.0  ;;  %v5332_v61 = vld [vmem:[#allocation25_spill] sm:$0xff] }
 0x654   :  { %v2103_v26 = vmax.f32 %v2071_v41, 0.0  ;;  %v5334_v41 = vld [vmem:[#allocation27_spill] sm:$0xff] }
 0x656   :  { %v3784_v44 = vpack.c.bf16 %v2104_v7, %v2103_v26  ;;  %v5335_v7 = vld [vmem:[#allocation28_spill] sm:$0xff]  ;;  %v5336_v26 = vld [vmem:[#allocation29_spill] sm:$0xff] }
 0x658   :  { %v3476_v37 = vpop.f32.mrb[94].mxu1  ;;  %3785 = vmatpush1.bf16.msra.mxu1 %v3784_v44  ;;  %v5337_v44 = vld [vmem:[#allocation30_spill] sm:$0xff] }
 0x659   :  { %v2074_v11 = vadd.f32 %v3476_v37, %v4344_v4  ;;  %v2034_v21 = vpop.f32.mrb[95].mxu1  ;;  %3786 = vmatprep.subr.bf16.mxu1 %v5256_v39  ;;  %v5329_v39 = vld [vmem:[#allocation22_spill] sm:$0xff]  ;;  %v5338_v37 = vld [vmem:[#allocation31_spill] sm:$0xff] }
 0x65a   :  { %v2073_v43 = vadd.f32 %v2034_v21, %v4347_v9  ;;  %v5340_v21 = vld [vmem:[#allocation33_spill] sm:$0xff] }
 0x65b   :  { %v2106_v12 = vmax.f32 %v2074_v11, 0.0  ;;  %v5339_v11 = vld [vmem:[#allocation32_spill] sm:$0xff] }
 0x65c   :  { %v2105_v31 = vmax.f32 %v2073_v43, 0.0  ;;  %v5341_v43 = vld [vmem:[#allocation34_spill] sm:$0xff] }
 0x65e   :  { %v3787_v58 = vpack.c.bf16 %v2106_v12, %v2105_v31  ;;  %v5342_v12 = vld [vmem:[#allocation35_spill] sm:$0xff]  ;;  %v5343_v31 = vld [vmem:[#allocation36_spill] sm:$0xff] }
 0x660   :  { %3788 = vmatpush1.bf16.msra.mxu1 %v3787_v58  ;;  %v5344_v58 = vld [vmem:[#allocation37_spill] sm:$0xff] }
 0x661   :  { %3853 = vmatprep.subr.bf16.mxu1 %v4368_v24 }
 0x663   :  { %2172 = vmatmul.mubr.f32.vlgmr.msra.gmra.mrb[96].mxu1 %v4355_v16  ;;  %v5313_v16 = vld [vmem:[#allocation6_spill] sm:$0xff] }
 0x664   :  { %2176 = vmatprep.mubr.f32.mxu1 %v4366_v22  ;;  %3861 = vmatpush3.bf16.msra.mxu1 %v4368_v24  ;;  %v5314_v22 = vld [vmem:[#allocation7_spill] sm:$0xff]  ;;  %v5315_v24 = vld [vmem:[#allocation8_spill] sm:$0xff] }
 0x665   :  { %3854 = vmatprep.subr.bf16.mxu1 %v4376_v27 }
 0x667   :  { %2177 = vmatmul.mubr.f32.gmra.mrb[98].mxu1 %v4387_v32  ;;  %v5317_v32 = vld [vmem:[#allocation10_spill] sm:$0xff] }
 0x668   :  { %2181 = vmatprep.mubr.f32.mxu1 %v4391_v34  ;;  %3862 = vmatpush3.bf16.msra.mxu1 %v4376_v27  ;;  %v5316_v27 = vld [vmem:[#allocation9_spill] sm:$0xff]  ;;  %v5318_v34 = vld [vmem:[#allocation11_spill] sm:$0xff] }
 0x669   :  { %3855 = vmatprep.subr.bf16.mxu1 %v4394_v36 }
 0x66b   :  { %2182 = vmatmul.mubr.f32.gmra.mrb[100].mxu1 %v4406_v46  ;;  %v5320_v46 = vld [vmem:[#allocation13_spill] sm:$0xff] }
 0x66c   :  { %2186 = vmatprep.mubr.f32.mxu1 %v4410_v50  ;;  %3863 = vmatpush3.bf16.msra.mxu1 %v4394_v36  ;;  %v5319_v36 = vld [vmem:[#allocation12_spill] sm:$0xff]  ;;  %v5321_v50 = vld [vmem:[#allocation14_spill] sm:$0xff] }
 0x66d   :  { %3856 = vmatprep.subr.bf16.mxu1 %v4413_v53 }
 0x66f   :  { %2187 = vmatmul.mubr.f32.gmra.mrb[102].mxu1 %v4425_v63  ;;  %v5323_v63 = vld [vmem:[#allocation16_spill] sm:$0xff] }
 0x670   :  { %2191 = vmatprep.mubr.f32.mxu1 %v4429_v2  ;;  %3864 = vmatpush3.bf16.msra.mxu1 %v4413_v53  ;;  %v5322_v53 = vld [vmem:[#allocation15_spill] sm:$0xff]  ;;  %v5324_v2 = vld [vmem:[#allocation17_spill] sm:$0xff] }
 0x671   :  { %3857 = vmatprep.subr.bf16.mxu1 %v4432_v6 }
 0x673   :  { %2192 = vmatmul.mubr.f32.gmra.mrb[104].mxu1 %v4444_v14  ;;  %v5326_v14 = vld [vmem:[#allocation19_spill] sm:$0xff] }
 0x674   :  { %2196 = vmatprep.mubr.f32.mxu1 %v4448_v17  ;;  %3865 = vmatpush3.bf16.msra.mxu1 %v4432_v6  ;;  %v5325_v6 = vld [vmem:[#allocation18_spill] sm:$0xff]  ;;  %v5327_v17 = vld [vmem:[#allocation20_spill] sm:$0xff] }
 0x675   :  { %3858 = vmatprep.subr.bf16.mxu1 %v4451_v19 }
 0x677   :  { %2197 = vmatmul.mubr.f32.gmra.mrb[106].mxu1 %v5313_v16  ;;  %v5345_v16 = vld [vmem:[#allocation38_spill] sm:$0xff] }
 0x678   :  { %2201 = vmatprep.mubr.f32.mxu1 %v5314_v22  ;;  %3866 = vmatpush3.bf16.msra.mxu1 %v4451_v19  ;;  %v5328_v19 = vld [vmem:[#allocation21_spill] sm:$0xff]  ;;  %v5346_v22 = vld [vmem:[#allocation39_spill] sm:$0xff] }
 0x679   :  { %3859 = vmatprep.subr.bf16.mxu1 %v5315_v24 }
 0x67b   :  { %2202 = vmatmul.mubr.f32.gmra.mrb[108].mxu1 %v5316_v27  ;;  %v5348_v27 = vld [vmem:[#allocation41_spill] sm:$0xff] }
 0x67c   :  { %2206 = vmatprep.mubr.f32.mxu1 %v5317_v32  ;;  %3867 = vmatpush3.bf16.msra.mxu1 %v5315_v24  ;;  %v5347_v24 = vld [vmem:[#allocation40_spill] sm:$0xff]  ;;  %v5349_v32 = vld [vmem:[#allocation42_spill] sm:$0xff] }
 0x67d   :  { %3860 = vmatprep.subr.bf16.mxu1 %v5318_v34 }
 0x67f   :  { %2207 = vmatmul.mubr.f32.gmra.mrb[110].mxu1 %v5319_v36  ;;  %v5351_v36 = vld [vmem:[#allocation44_spill] sm:$0xff] }
 0x680   :  { %2211 = vmatprep.mubr.f32.mxu1 %v5320_v46  ;;  %3868 = vmatpush3.bf16.msra.mxu1 %v5318_v34  ;;  %v5350_v34 = vld [vmem:[#allocation43_spill] sm:$0xff]  ;;  %v5352_v46 = vld [vmem:[#allocation45_spill] sm:$0xff] }
 0x683   :  { %2212 = vmatmul.mubr.f32.gmra.mrb[112].mxu1 %v5321_v50  ;;  %v5353_v50 = vld [vmem:[#allocation46_spill] sm:$0xff] }
 0x684   :  { %2216 = vmatprep.mubr.f32.mxu1 %v5322_v53  ;;  %v5354_v53 = vld [vmem:[#allocation47_spill] sm:$0xff] }
 0x687   :  { %2217 = vmatmul.mubr.f32.gmra.mrb[114].mxu1 %v5323_v63  ;;  %v5355_v63 = vld [vmem:[#allocation48_spill] sm:$0xff] }
 0x688   :  { %2221 = vmatprep.mubr.f32.mxu1 %v5324_v2  ;;  %v5356_v2 = vld [vmem:[#allocation49_spill] sm:$0xff] }
 0x68b   :  { %2222 = vmatmul.mubr.f32.gmra.mrb[116].mxu1 %v5325_v6  ;;  %v5357_v6 = vld [vmem:[#allocation50_spill] sm:$0xff] }
 0x68c   :  { %2226 = vmatprep.mubr.f32.mxu1 %v5326_v14  ;;  %v5358_v14 = vld [vmem:[#allocation51_spill] sm:$0xff] }
 0x68f   :  { %2227 = vmatmul.mubr.f32.gmra.mrb[118].mxu1 %v5327_v17  ;;  %v5359_v17 = vld [vmem:[#allocation52_spill] sm:$0xff] }
 0x690   :  { %2231 = vmatprep.mubr.f32.mxu1 %v5328_v19  ;;  %v5360_v19 = vld [vmem:[#allocation53_spill] sm:$0xff] }
 0x693   :  { %2232 = vmatmul.mubr.f32.gmra.mrb[120].mxu1 %v5329_v39  ;;  %v5361_v39 = vld [vmem:[#allocation54_spill] sm:$0xff] }
 0x694   :  { %2236 = vmatprep.mubr.f32.mxu1 %v5330_v29  ;;  %v5362_v29 = vld [vmem:[#allocation55_spill] sm:$0xff] }
 0x697   :  { %2237 = vmatmul.mubr.f32.gmra.mrb[122].mxu1 %v5331_v55  ;;  %v5363_v55 = vld [vmem:[#allocation56_spill] sm:$0xff] }
 0x698   :  { %2241 = vmatprep.mubr.f32.mxu1 %v5332_v61  ;;  %v5364_v61 = vld [vmem:[#allocation57_spill] sm:$0xff] }
 0x69b   :  { %2242 = vmatmul.mubr.f32.gmra.mrb[124].mxu1 %v5333_v42  ;;  %v5365_v42 = vld [vmem:[#allocation58_spill] sm:$0xff] }
 0x69c   :  { %2246 = vmatprep.mubr.f32.mxu1 %v5334_v41  ;;  %v5366_v41 = vld [vmem:[#allocation59_spill] sm:$0xff] }
 0x69f   :  { %2247 = vmatmul.mubr.f32.gmra.mrb[126].mxu1 %v5335_v7  ;;  %v5367_v7 = vld [vmem:[#allocation60_spill] sm:$0xff] }
 0x6a0   :  { %2251 = vmatprep.mubr.f32.mxu1 %v5336_v26 }
 0x6a3   :  { %2252 = vmatmul.mubr.f32.gmra.mrb[128].mxu1 %v5337_v44 }
 0x6a4   :  { %2256 = vmatprep.mubr.f32.mxu1 %v5338_v37 }
 0x6a7   :  { %2257 = vmatmul.mubr.f32.gmra.mrb[130].mxu1 %v5339_v11 }
 0x6a8   :  { %2261 = vmatprep.mubr.f32.mxu1 %v5340_v21 }
 0x6ab   :  { %2262 = vmatmul.mubr.f32.gmra.mrb[132].mxu1 %v5341_v43 }
 0x6ac   :  { %2266 = vmatprep.mubr.f32.mxu1 %v5342_v12 }
 0x6af   :  { %2267 = vmatmul.mubr.f32.gmra.mrb[134].mxu1 %v5343_v31 }
 0x6b0   :  { %2271 = vmatprep.mubr.f32.mxu1 %v5344_v58 }
 0x6b3   :  { %2272 = vmatmul.mubr.f32.gmra.mrb[136].mxu1 %v5345_v16 }
 0x6b4   :  { %2276 = vmatprep.mubr.f32.mxu1 %v5346_v22 }
 0x6b7   :  { %2277 = vmatmul.mubr.f32.gmra.mrb[138].mxu1 %v5347_v24 }
 0x6b8   :  { %2281 = vmatprep.mubr.f32.mxu1 %v5348_v27 }
 0x6bb   :  { %2282 = vmatmul.mubr.f32.gmra.mrb[140].mxu1 %v5349_v32 }
 0x6bc   :  { %2286 = vmatprep.mubr.f32.mxu1 %v5350_v34 }
 0x6bf   :  { %2287 = vmatmul.mubr.f32.gmra.mrb[142].mxu1 %v5351_v36 }
 0x6c0   :  { %2291 = vmatprep.mubr.f32.mxu1 %v5352_v46 }
 0x6c3   :  { %2292 = vmatmul.mubr.f32.gmra.mrb[144].mxu1 %v5353_v50 }
 0x6c4   :  { %2296 = vmatprep.mubr.f32.mxu1 %v5354_v53 }
 0x6c7   :  { %2297 = vmatmul.mubr.f32.gmra.mrb[146].mxu1 %v5355_v63 }
 0x6c8   :  { %2301 = vmatprep.mubr.f32.mxu1 %v5356_v2 }
 0x6cb   :  { %2302 = vmatmul.mubr.f32.gmra.mrb[148].mxu1 %v5357_v6 }
 0x6cc   :  { %2306 = vmatprep.mubr.f32.mxu1 %v5358_v14 }
 0x6cf   :  { %2307 = vmatmul.mubr.f32.gmra.mrb[150].mxu1 %v5359_v17 }
 0x6d0   :  { %2311 = vmatprep.mubr.f32.mxu1 %v5360_v19 }
 0x6d3   :  { %2312 = vmatmul.mubr.f32.gmra.mrb[152].mxu1 %v5361_v39 }
 0x6d4   :  { %2316 = vmatprep.mubr.f32.mxu1 %v5362_v29 }
 0x6d7   :  { %2317 = vmatmul.mubr.f32.gmra.mrb[154].mxu1 %v5363_v55 }
 0x6d8   :  { %2321 = vmatprep.mubr.f32.mxu1 %v5364_v61 }
 0x6db   :  { %2322 = vmatmul.mubr.f32.gmra.mrb[156].mxu1 %v5365_v42 }
 0x6dc   :  { %2326 = vmatprep.mubr.f32.mxu1 %v5366_v41 }
 0x6df   :  { %2327 = vmatmul.mubr.f32.gmra.mrb[158].mxu1 %v5367_v7 }
 0x736   :  { %v2173_v26 = vpop.f32.mrb[96].mxu1 }
 0x737   :  { %v2175_v44 = vpop.f32.mrb[97].mxu1  ;;  %3509 = vmatprep.mubr.f32.mxu0 %v2173_v26 }
 0x73a   :  { %v2178_v37 = vpop.f32.mrb[98].mxu1 }
 0x73b   :  { %3510 = vmatmul.mubr.f32.vlgmr.msra.gmra.mrb[136].mxu0 %v2178_v37  ;;  %v2180_v11 = vpop.f32.mrb[99].mxu1 }
 0x73e   :  { %v2183_v21 = vpop.f32.mrb[100].mxu1 }
 0x73f   :  { %v2185_v43 = vpop.f32.mrb[101].mxu1  ;;  %3512 = vmatprep.mubr.f32.mxu0 %v2183_v21 }
 0x742   :  { %v2188_v12 = vpop.f32.mrb[102].mxu1 }
 0x743   :  { %3513 = vmatmul.mubr.f32.gmra.mrb[138].mxu0 %v2188_v12  ;;  %v2190_v31 = vpop.f32.mrb[103].mxu1 }
 0x746   :  { %v2193_v58 = vpop.f32.mrb[104].mxu1 }
 0x747   :  { %v2195_v16 = vpop.f32.mrb[105].mxu1  ;;  %3515 = vmatprep.mubr.f32.mxu0 %v2193_v58 }
 0x74a   :  { %v2198_v22 = vpop.f32.mrb[106].mxu1 }
 0x74b   :  { %3516 = vmatmul.mubr.f32.gmra.mrb[140].mxu0 %v2198_v22  ;;  %v2200_v24 = vpop.f32.mrb[107].mxu1 }
 0x74e   :  { %v2203_v27 = vpop.f32.mrb[108].mxu1 }
 0x74f   :  { %v2205_v32 = vpop.f32.mrb[109].mxu1  ;;  %3518 = vmatprep.mubr.f32.mxu0 %v2203_v27 }
 0x752   :  { %v2208_v34 = vpop.f32.mrb[110].mxu1 }
 0x753   :  { %3519 = vmatmul.mubr.f32.gmra.mrb[142].mxu0 %v2208_v34  ;;  %v2210_v36 = vpop.f32.mrb[111].mxu1 }
 0x756   :  { %v2213_v46 = vpop.f32.mrb[112].mxu1 }
 0x757   :  { %v2215_v50 = vpop.f32.mrb[113].mxu1  ;;  %3521 = vmatprep.mubr.f32.mxu0 %v2213_v46 }
 0x75a   :  { %v2218_v53 = vpop.f32.mrb[114].mxu1 }
 0x75b   :  { %3522 = vmatmul.mubr.f32.gmra.mrb[144].mxu0 %v2218_v53  ;;  %v2220_v63 = vpop.f32.mrb[115].mxu1 }
 0x75e   :  { %v2223_v2 = vpop.f32.mrb[116].mxu1 }
 0x75f   :  { %v2225_v6 = vpop.f32.mrb[117].mxu1  ;;  %3524 = vmatprep.mubr.f32.mxu0 %v2223_v2 }
 0x762   :  { %v2228_v14 = vpop.f32.mrb[118].mxu1 }
 0x763   :  { %3525 = vmatmul.mubr.f32.gmra.mrb[146].mxu0 %v2228_v14  ;;  %v2230_v17 = vpop.f32.mrb[119].mxu1 }
 0x766   :  { %v2233_v19 = vpop.f32.mrb[120].mxu1 }
 0x767   :  { %v2235_v39 = vpop.f32.mrb[121].mxu1  ;;  %3527 = vmatprep.mubr.f32.mxu0 %v2233_v19 }
 0x76a   :  { %v2238_v29 = vpop.f32.mrb[122].mxu1 }
 0x76b   :  { %3528 = vmatmul.mubr.f32.gmra.mrb[148].mxu0 %v2238_v29  ;;  %v2240_v55 = vpop.f32.mrb[123].mxu1 }
 0x76e   :  { %v2243_v61 = vpop.f32.mrb[124].mxu1 }
 0x76f   :  { %v2245_v42 = vpop.f32.mrb[125].mxu1  ;;  %3530 = vmatprep.mubr.f32.mxu0 %v2243_v61 }
 0x772   :  { %v2248_v41 = vpop.f32.mrb[126].mxu1 }
 0x773   :  { %3531 = vmatmul.mubr.f32.gmra.mrb[150].mxu0 %v2248_v41  ;;  %v2250_v7 = vpop.f32.mrb[127].mxu1 }
 0x776   :  { %v2253_v26 = vpop.f32.mrb[128].mxu1 }
 0x777   :  { %v2255_v44 = vpop.f32.mrb[129].mxu1  ;;  %3533 = vmatprep.mubr.f32.mxu0 %v2253_v26 }
 0x778   :  { %v4989_v44 = vld [vmem:[%s5078_s2] sm:$0xff] }
 0x77a   :  { %v2258_v37 = vpop.f32.mrb[130].mxu1 }
 0x77b   :  { %3534 = vmatmul.mubr.f32.gmra.mrb[152].mxu0 %v2258_v37  ;;  %v2260_v11 = vpop.f32.mrb[131].mxu1 }
 0x77e   :  { %v2263_v21 = vpop.f32.mrb[132].mxu1 }
 0x77f   :  { %v2265_v43 = vpop.f32.mrb[133].mxu1  ;;  %3536 = vmatprep.mubr.f32.mxu0 %v2263_v21  ;;  %v199_v21 = vunpack.c.h.bf16 %v4989_v44 }
 0x782   :  { %v2268_v12 = vpop.f32.mrb[134].mxu1 }
 0x783   :  { %3537 = vmatmul.mubr.f32.gmra.mrb[154].mxu0 %v2268_v12  ;;  %v2270_v31 = vpop.f32.mrb[135].mxu1 }
 0x786   :  { %v2273_v58 = vpop.f32.mrb[136].mxu1 }
 0x787   :  { %v2275_v16 = vpop.f32.mrb[137].mxu1  ;;  %3539 = vmatprep.mubr.f32.mxu0 %v2273_v58 }
 0x78a   :  { %v2278_v22 = vpop.f32.mrb[138].mxu1 }
 0x78b   :  { %3540 = vmatmul.mubr.f32.gmra.mrb[156].mxu0 %v2278_v22  ;;  %v2280_v24 = vpop.f32.mrb[139].mxu1 }
 0x78e   :  { %v2283_v27 = vpop.f32.mrb[140].mxu1 }
 0x78f   :  { %v2285_v32 = vpop.f32.mrb[141].mxu1  ;;  %3542 = vmatprep.mubr.f32.mxu0 %v2283_v27 }
 0x792   :  { %v2288_v34 = vpop.f32.mrb[142].mxu1 }
 0x793   :  { %3543 = vmatmul.mubr.f32.gmra.mrb[158].mxu0 %v2288_v34  ;;  %v2290_v36 = vpop.f32.mrb[143].mxu1 }
 0x794   :  { %2685 = vmatprep.mubr.f32.mxu0 %v199_v21 }
 0x796   :  { %v2293_v46 = vpop.f32.mrb[144].mxu1 }
 0x797   :  { %v2295_v50 = vpop.f32.mrb[145].mxu1  ;;  %3545 = vmatprep.mubr.f32.mxu1 %v2293_v46 }
 0x79a   :  { %v2298_v53 = vpop.f32.mrb[146].mxu1 }
 0x79b   :  { %3546 = vmatmul.mubr.f32.vlgmr.msra.gmra.mrb[160].mxu1 %v2298_v53  ;;  %v2300_v63 = vpop.f32.mrb[147].mxu1 }
 0x79e   :  { %v2303_v2 = vpop.f32.mrb[148].mxu1 }
 0x79f   :  { %v2305_v6 = vpop.f32.mrb[149].mxu1  ;;  %3548 = vmatprep.mubr.f32.mxu1 %v2303_v2 }
 0x7a2   :  { %v2308_v14 = vpop.f32.mrb[150].mxu1 }
 0x7a3   :  { %3549 = vmatmul.mubr.f32.gmra.mrb[162].mxu1 %v2308_v14  ;;  %v2310_v17 = vpop.f32.mrb[151].mxu1 }
 0x7a6   :  { %v2313_v19 = vpop.f32.mrb[152].mxu1 }
 0x7a7   :  { %v2315_v39 = vpop.f32.mrb[153].mxu1  ;;  %3551 = vmatprep.mubr.f32.mxu1 %v2313_v19 }
 0x7aa   :  { %v2318_v29 = vpop.f32.mrb[154].mxu1 }
 0x7ab   :  { %3552 = vmatmul.mubr.f32.gmra.mrb[164].mxu1 %v2318_v29  ;;  %v2320_v55 = vpop.f32.mrb[155].mxu1 }
 0x7ae   :  { %v2323_v61 = vpop.f32.mrb[156].mxu1 }
 0x7af   :  { %v2325_v42 = vpop.f32.mrb[157].mxu1  ;;  %3554 = vmatprep.mubr.f32.mxu1 %v2323_v61 }
 0x7b2   :  { %v2328_v41 = vpop.f32.mrb[158].mxu1 }
 0x7b3   :  { %3555 = vmatmul.mubr.f32.gmra.mrb[166].mxu1 %v2328_v41  ;;  %v2330_v7 = vpop.f32.mrb[159].mxu1 }
 0x80e   :  { %v3511_v26 = vpop.f32.mrb[136].mxu0 }
 0x80f   :  { %v2558_v37 = vadd.f32 %v3511_v26, %v4240_v45  ;;  %v2398_v11 = vpop.f32.mrb[137].mxu0 }
 0x810   :  { %v2557_v43 = vadd.f32 %v2398_v11, %v4243_v47 }
 0x811   :  { %v2590_v12 = vmax.f32 %v2558_v37, 0.0 }
 0x812   :  { %v2589_v31 = vmax.f32 %v2557_v43, 0.0 }
 0x814   :  { %v3823_v58 = vpack.c.bf16 %v2590_v12, %v2589_v31 }
 0x816   :  { %v3514_v16 = vpop.f32.mrb[138].mxu0 }
 0x817   :  { %v2560_v22 = vadd.f32 %v3514_v16, %v4246_v49  ;;  %v2408_v24 = vpop.f32.mrb[139].mxu0 }
 0x818   :  { %v2559_v27 = vadd.f32 %v2408_v24, %v4249_v52 }
 0x819   :  { %v2592_v32 = vmax.f32 %v2560_v22, 0.0 }
 0x81a   :  { %v2591_v34 = vmax.f32 %v2559_v27, 0.0 }
 0x81c   :  { %v3827_v36 = vpack.c.bf16 %v2592_v32, %v2591_v34 }
 0x81e   :  { %v3517_v46 = vpop.f32.mrb[140].mxu0 }
 0x81f   :  { %v2562_v45 = vadd.f32 %v3517_v46, %v4253_v54  ;;  %v2418_v50 = vpop.f32.mrb[141].mxu0 }
 0x820   :  { %v2561_v53 = vadd.f32 %v2418_v50, %v4256_v57 }
 0x821   :  { %v2594_v47 = vmax.f32 %v2562_v45, 0.0 }
 0x822   :  { %v2593_v63 = vmax.f32 %v2561_v53, 0.0 }
 0x824   :  { %v4998_v2 = vpack.c.bf16 %v2594_v47, %v2593_v63 }
 0x826   :  { %v3520_v6 = vpop.f32.mrb[142].mxu0 }
 0x827   :  { %v2564_v14 = vadd.f32 %v3520_v6, %v4260_v59  ;;  %v2428_v49 = vpop.f32.mrb[143].mxu0 }
 0x828   :  { %v2563_v17 = vadd.f32 %v2428_v49, %v4263_v62 }
 0x829   :  { %v2596_v52 = vmax.f32 %v2564_v14, 0.0 }
 0x82a   :  { %v2595_v19 = vmax.f32 %v2563_v17, 0.0 }
 0x82c   :  { %v5002_v39 = vpack.c.bf16 %v2596_v52, %v2595_v19 }
 0x82e   :  { %v3523_v29 = vpop.f32.mrb[144].mxu0 }
 0x82f   :  { %v2566_v54 = vadd.f32 %v3523_v29, %v4267_v0  ;;  %v2438_v55 = vpop.f32.mrb[145].mxu0 }
 0x830   :  { %v2565_v57 = vadd.f32 %v2438_v55, %v4270_v3 }
 0x831   :  { %v2598_v61 = vmax.f32 %v2566_v54, 0.0 }
 0x832   :  { %v2597_v42 = vmax.f32 %v2565_v57, 0.0 }
 0x834   :  { %v5006_v41 = vpack.c.bf16 %v2598_v61, %v2597_v42 }
 0x836   :  { %v3526_v7 = vpop.f32.mrb[146].mxu0 }
 0x837   :  { %v2568_v59 = vadd.f32 %v3526_v7, %v4274_v5  ;;  %v2448_v26 = vpop.f32.mrb[147].mxu0 }
 0x838   :  { %v2567_v62 = vadd.f32 %v2448_v26, %v4277_v8 }
 0x839   :  { %v2600_v37 = vmax.f32 %v2568_v59, 0.0 }
 0x83a   :  { %v2599_v11 = vmax.f32 %v2567_v62, 0.0 }
 0x83c   :  { %v5010_v21 = vpack.c.bf16 %v2600_v37, %v2599_v11 }
 0x83e   :  { %v3529_v43 = vpop.f32.mrb[148].mxu0 }
 0x83f   :  { %v2570_v0 = vadd.f32 %v3529_v43, %v4281_v10  ;;  %v2458_v12 = vpop.f32.mrb[149].mxu0 }
 0x840   :  { %v2569_v3 = vadd.f32 %v2458_v12, %v4284_v13 }
 0x841   :  { %v2602_v31 = vmax.f32 %v2570_v0, 0.0 }
 0x842   :  { %v2601_v16 = vmax.f32 %v2569_v3, 0.0 }
 0x844   :  { %v5014_v22 = vpack.c.bf16 %v2602_v31, %v2601_v16 }
 0x846   :  { %v3532_v24 = vpop.f32.mrb[150].mxu0 }
 0x847   :  { %v2572_v5 = vadd.f32 %v3532_v24, %v4288_v15  ;;  %v2468_v27 = vpop.f32.mrb[151].mxu0 }
 0x848   :  { %v2571_v8 = vadd.f32 %v2468_v27, %v4291_v18 }
 0x849   :  { %v2604_v32 = vmax.f32 %v2572_v5, 0.0 }
 0x84a   :  { %v2603_v34 = vmax.f32 %v2571_v8, 0.0 }
 0x84c   :  { %v5018_v46 = vpack.c.bf16 %v2604_v32, %v2603_v34 }
 0x84e   :  { %v3535_v45 = vpop.f32.mrb[152].mxu0 }
 0x84f   :  { %v2574_v10 = vadd.f32 %v3535_v45, %v4295_v20  ;;  %v2478_v50 = vpop.f32.mrb[153].mxu0  ;;  %v193_v45 = vld [vmem:[%s5078_s2 + $0x18] sm:$0xff] }
 0x850   :  { %v2573_v13 = vadd.f32 %v2478_v50, %v4298_v23  ;;  %v205_v50 = vunpack.c.h.bf16 %v193_v45 }
 0x851   :  { %v2606_v53 = vmax.f32 %v2574_v10, 0.0 }
 0x852   :  { %v2605_v47 = vmax.f32 %v2573_v13, 0.0 }
 0x854   :  { %v3821_v63 = vpack.c.bf16 %v2606_v53, %v2605_v47  ;;  %v195_v53 = vld [vmem:[%s5078_s2 + $0x28] sm:$0xff] }
 0x856   :  { %v3538_v6 = vpop.f32.mrb[154].mxu0  ;;  %3822 = vmatprep.subr.bf16.mxu0 %v3821_v63  ;;  %v209_v63 = vunpack.c.h.bf16 %v195_v53 }
 0x857   :  { %v2576_v15 = vadd.f32 %v3538_v6, %v4302_v25  ;;  %v2488_v14 = vpop.f32.mrb[155].mxu0  ;;  %3824 = vmatpush3.bf16.msra.mxu0 %v3823_v58  ;;  %v196_v6 = vld [vmem:[%s5078_s2 + $0x30] sm:$0xff] }
 0x858   :  { %v2575_v18 = vadd.f32 %v2488_v14, %v4305_v28  ;;  %v211_v14 = vunpack.c.h.bf16 %v196_v6 }
 0x859   :  { %v2608_v49 = vmax.f32 %v2576_v15, 0.0  ;;  %v208_v15 = vunpack.c.l.bf16 %v195_v53 }
 0x85a   :  { %v2607_v17 = vmax.f32 %v2575_v18, 0.0  ;;  %v197_v18 = vld [vmem:[%s5078_s2 + $0x38] sm:$0xff] }
 0x85c   :  { %v3825_v52 = vpack.c.bf16 %v2608_v49, %v2607_v17  ;;  %v210_v49 = vunpack.c.l.bf16 %v196_v6  ;;  %v213_v17 = vunpack.c.h.bf16 %v197_v18 }
 0x85e   :  { %v3541_v19 = vpop.f32.mrb[156].mxu0  ;;  %3826 = vmatprep.subr.bf16.mxu0 %v3825_v52  ;;  %v212_v52 = vunpack.c.l.bf16 %v197_v18 }
 0x85f   :  { %v2578_v20 = vadd.f32 %v3541_v19, %v4309_v30  ;;  %v2498_v29 = vpop.f32.mrb[157].mxu0  ;;  %3828 = vmatpush3.bf16.msra.mxu0 %v3827_v36 }
 0x860   :  { %v2577_v23 = vadd.f32 %v2498_v29, %v4312_v33 }
 0x861   :  { %v2610_v54 = vmax.f32 %v2578_v20, 0.0 }
 0x862   :  { %v2609_v55 = vmax.f32 %v2577_v23, 0.0 }
 0x864   :  { %v3829_v57 = vpack.c.bf16 %v2610_v54, %v2609_v55 }
 0x866   :  { %v3544_v61 = vpop.f32.mrb[158].mxu0  ;;  %3830 = vmatprep.subr.bf16.mxu0 %v3829_v57 }
 0x867   :  { %v2580_v25 = vadd.f32 %v3544_v61, %v4316_v35  ;;  %v2508_v58 = vpop.f32.mrb[159].mxu0  ;;  %3832 = vmatpush3.bf16.msra.mxu0 %v4998_v2 }
 0x868   :  { %v2579_v28 = vadd.f32 %v2508_v58, %v4319_v38 }
 0x869   :  { %v2612_v42 = vmax.f32 %v2580_v25, 0.0 }
 0x86a   :  { %v2611_v7 = vmax.f32 %v2579_v28, 0.0 }
 0x86c   :  { %v3833_v59 = vpack.c.bf16 %v2612_v42, %v2611_v7 }
 0x86e   :  { %v3547_v30 = vpop.f32.mrb[160].mxu1  ;;  %3834 = vmatprep.subr.bf16.mxu0 %v3833_v59 }
 0x86f   :  { %v2582_v36 = vadd.f32 %v3547_v30, %v4323_v40  ;;  %v2518_v33 = vpop.f32.mrb[161].mxu1  ;;  %3836 = vmatpush3.bf16.msra.mxu0 %v5002_v39 }
 0x870   :  { %v2581_v26 = vadd.f32 %v2518_v33, %v4326_v48 }
 0x871   :  { %v2614_v62 = vmax.f32 %v2582_v36, 0.0 }
 0x872   :  { %v2613_v37 = vmax.f32 %v2581_v26, 0.0 }
 0x874   :  { %v3837_v35 = vpack.c.bf16 %v2614_v62, %v2613_v37 }
 0x876   :  { %v3550_v11 = vpop.f32.mrb[162].mxu1  ;;  %3838 = vmatprep.subr.bf16.mxu0 %v3837_v35 }
 0x877   :  { %v2584_v2 = vadd.f32 %v3550_v11, %v4330_v51  ;;  %v2528_v38 = vpop.f32.mrb[163].mxu1  ;;  %3840 = vmatpush3.bf16.msra.mxu0 %v5006_v41 }
 0x878   :  { %v2583_v43 = vadd.f32 %v2528_v38, %v4333_v56 }
 0x879   :  { %v2616_v0 = vmax.f32 %v2584_v2, 0.0 }
 0x87a   :  { %v2615_v12 = vmax.f32 %v2583_v43, 0.0 }
 0x87c   :  { %v3841_v40 = vpack.c.bf16 %v2616_v0, %v2615_v12 }
 0x87e   :  { %v3553_v3 = vpop.f32.mrb[164].mxu1  ;;  %3842 = vmatprep.subr.bf16.mxu0 %v3841_v40 }
 0x87f   :  { %v2586_v39 = vadd.f32 %v3553_v3, %v4337_v60  ;;  %v2538_v48 = vpop.f32.mrb[165].mxu1  ;;  %3844 = vmatpush3.bf16.msra.mxu0 %v5010_v21  ;;  %v191_v21 = vld [vmem:[%s5078_s2 + $0x8] sm:$0xff] }
 0x880   :  { %v2585_v31 = vadd.f32 %v2538_v48, %v4340_v1  ;;  %v198_v1 = vunpack.c.l.bf16 %v4989_v44  ;;  %v201_v34 = vunpack.c.h.bf16 %v191_v21  ;;  %v194_v44 = vld [vmem:[%s5078_s2 + $0x20] sm:$0xff] }
 0x881   :  { %v2618_v16 = vmax.f32 %v2586_v39, 0.0  ;;  %v207_v13 = vunpack.c.h.bf16 %v194_v44  ;;  %v206_v47 = vunpack.c.l.bf16 %v194_v44 }
 0x882   :  { %v2617_v24 = vmax.f32 %v2585_v31, 0.0 }
 0x884   :  { %v3845_v51 = vpack.c.bf16 %v2618_v16, %v2617_v24 }
 0x886   :  { %v3556_v5 = vpop.f32.mrb[166].mxu1  ;;  %3846 = vmatprep.subr.bf16.mxu0 %v3845_v51 }
 0x887   :  { %v2588_v41 = vadd.f32 %v3556_v5, %v4344_v4  ;;  %v2548_v56 = vpop.f32.mrb[167].mxu1  ;;  %3848 = vmatpush3.bf16.msra.mxu0 %v5014_v22  ;;  %v192_v4 = vld [vmem:[%s5078_s2 + $0x10] sm:$0xff]  ;;  %v200_v22 = vunpack.c.l.bf16 %v191_v21  ;;  %s3930_s2 = smov [#allocation2]  }
 0x888   :  { %v2587_v27 = vadd.f32 %v2548_v56, %v4347_v9  ;;  %v203_v9 = vunpack.c.h.bf16 %v192_v4  ;;  %v202_v10 = vunpack.c.l.bf16 %v192_v4  ;;  %s2739_s21 = sshll.u32 %s3930_s2, 4  ;;  %s2740_s21 = int_to_ptr.vmem [resolvable:$true] %s2739_s21 }
 0x889   :  { %v2620_v8 = vmax.f32 %v2588_v41, 0.0  ;;  %s3905_s22 = scalar_lea.vmem %s2740_s21, 1024  ;;  %p3910_p1 = scmp.lt.s32.totalorder %s2740_s21, %s2740_s21 }
 0x88a   :  { %v2619_v32 = vmax.f32 %v2587_v27, 0.0  ;;  %p3906_p0 = scmp.ne.s32.totalorder %s2740_s21, %s3905_s22  ;;  %p3911_p2 = scmp.lt.s32.totalorder %s3905_s22, %s3905_s22 }
 0x88c   :  { %v3849_v60 = vpack.c.bf16 %v2620_v8, %v2619_v32  ;;  %p3912_p3 = por %p3911_p2, %p3910_p1 }
 0x88e   :  { %3850 = vmatprep.subr.bf16.mxu0 %v3849_v60  ;;  %p3913_p4 = pnand %p3912_p3, %p3906_p0 }
 0x88f   :  { %3852 = vmatpush3.bf16.msra.mxu0 %v5018_v46  ;;  %v204_v46 = vunpack.c.l.bf16 %v193_v45 }
 0x892   :  { %2686 = vmatmul.mubr.f32.vlgmr.msra.gmra.mrb[160].mxu0 %v198_v1 }
 0x893   :  { %2690 = vmatprep.mubr.f32.mxu0 %v201_v34 }
 0x896   :  { %2691 = vmatmul.mubr.f32.gmra.mrb[162].mxu0 %v200_v22 }
 0x897   :  { %2695 = vmatprep.mubr.f32.mxu0 %v203_v9 }
 0x89a   :  { %2696 = vmatmul.mubr.f32.gmra.mrb[164].mxu0 %v202_v10 }
 0x89b   :  { %2700 = vmatprep.mubr.f32.mxu0 %v205_v50 }
 0x89e   :  { %2701 = vmatmul.mubr.f32.gmra.mrb[166].mxu0 %v204_v46 }
 0x89f   :  { %2705 = vmatprep.mubr.f32.mxu0 %v207_v13 }
 0x8a2   :  { %2706 = vmatmul.mubr.f32.gmra.mrb[168].mxu0 %v206_v47 }
 0x8a3   :  { %2710 = vmatprep.mubr.f32.mxu0 %v209_v63 }
 0x8a6   :  { %2711 = vmatmul.mubr.f32.gmra.mrb[170].mxu0 %v208_v15 }
 0x8a7   :  { %2715 = vmatprep.mubr.f32.mxu0 %v211_v14 }
 0x8aa   :  { %2716 = vmatmul.mubr.f32.gmra.mrb[172].mxu0 %v210_v49 }
 0x8ab   :  { %2720 = vmatprep.mubr.f32.mxu0 %v213_v17 }
 0x8ae   :  { %2721 = vmatmul.mubr.f32.gmra.mrb[174].mxu0 %v212_v52 }
 0x965   :  { %v3161_v19 = vpop.f32.mrb[160].mxu0 }
 0x966   :  { %v3162_v20 = vpop.f32.mrb[161].mxu0 }
 0x967   :  { %v3163_v29 = vadd.f32 %v3162_v20, %v3161_v19 }
 0x969   :  { %2726 = vst [vmem:[#allocation2] sm:$0xff] %v3163_v29  ;;  %v3164_v23 = vpop.f32.mrb[162].mxu0 }
 0x96a   :  { %v3165_v54 = vpop.f32.mrb[163].mxu0 }
 0x96b   :  { %v3166_v55 = vadd.f32 %v3165_v54, %v3164_v23 }
 0x96d   :  { %2727 = vst [vmem:[#allocation2 + $0x8] sm:$0xff] %v3166_v55  ;;  %v3167_v57 = vpop.f32.mrb[164].mxu0 }
 0x96e   :  { %v3168_v61 = vpop.f32.mrb[165].mxu0 }
 0x96f   :  { %v3169_v25 = vadd.f32 %v3168_v61, %v3167_v57 }
 0x971   :  { %2728 = vst [vmem:[#allocation2 + $0x10] sm:$0xff] %v3169_v25  ;;  %v3170_v58 = vpop.f32.mrb[166].mxu0 }
 0x972   :  { %v3171_v28 = vpop.f32.mrb[167].mxu0 }
 0x973   :  { %v3172_v42 = vadd.f32 %v3171_v28, %v3170_v58 }
 0x975   :  { %2729 = vst [vmem:[#allocation2 + $0x18] sm:$0xff] %v3172_v42  ;;  %v3173_v7 = vpop.f32.mrb[168].mxu0 }
 0x976   :  { %v3174_v59 = vpop.f32.mrb[169].mxu0 }
 0x977   :  { %v3175_v30 = vadd.f32 %v3174_v59, %v3173_v7 }
 0x979   :  { %2730 = vst [vmem:[#allocation2 + $0x20] sm:$0xff] %v3175_v30  ;;  %v3176_v36 = vpop.f32.mrb[170].mxu0 }
 0x97a   :  { %v3177_v33 = vpop.f32.mrb[171].mxu0 }
 0x97b   :  { %v3178_v26 = vadd.f32 %v3177_v33, %v3176_v36 }
 0x97d   :  { %2731 = vst [vmem:[#allocation2 + $0x28] sm:$0xff] %v3178_v26  ;;  %v3179_v62 = vpop.f32.mrb[172].mxu0 }
 0x97e   :  { %v3180_v37 = vpop.f32.mrb[173].mxu0 }
 0x97f   :  { %v3181_v35 = vadd.f32 %v3180_v37, %v3179_v62 }
 0x981   :  { %2732 = vst [vmem:[#allocation2 + $0x30] sm:$0xff] %v3181_v35  ;;  %v3182_v11 = vpop.f32.mrb[174].mxu0 }
 0x982   :  { %v3183_v2 = vpop.f32.mrb[175].mxu0 }
 0x983   :  { %v3184_v38 = vadd.f32 %v3183_v2, %v3182_v11 }
 0x985   :  { %2733 = vst [vmem:[#allocation2 + $0x38] sm:$0xff] %v3184_v38 }
 0x986   :  { %3916 = shalt.err (!%p3913_p4)
}
 0x987   :  { %s3917_s24 = scalar_lea.hbm %s5084_s8, 1024 }
 0x988   :  { %p3918_p5 = scmp.ne.s32.totalorder %s5084_s8, %s3917_s24  ;;  %p3921_p6 = scmp.lt.u32.totalorder %s3917_s24, %s5084_s8 }
 0x98a   :  { %p3923_p7 = pnand %p3921_p6, %p3918_p5 }
 0x98c   :  { %3926 = shalt.err (!%p3923_p7)
}
 0x98d   :  { %s3931_s29 = smov 128   ;;  %s3932_s30 = smov 8  }
 0x98e   :  { %2745 = dma.vmem_to_hbm [thread:$0]  %s2740_s21, 1024, %s5084_s8, [#allocation3], %s3931_s29, %s3931_s29, %s3932_s30  }
 0x98f   :  { %3927 = dma.done.wait [#allocation3], 1024  }
 0x990   :  { %3928 = vsyncadd [#allocation3], 4294966272 }
 0x991   :  { %2749 = vsyncpa [#allocation3], 1 }

</bundles_post_ra>
